<compile_context>
chip_gen: v7x
topology: tpu7x:2x2x1
jax: 0.10.0
libtpu: 0.0.40
codegen_flags: <defaults>
</compile_context>

<pallas_src>
import math
import functools
from functools import lru_cache

import jax
import jax.numpy as jnp
from jax.experimental import pallas as pl
from jax.experimental.pallas import tpu as pltpu

EPS = 1e-5
LANE = 128                      # channel padding granularity (lane width)
STEM_K = 27                     # 3x3 conv over 3 input channels (im2col)
STEM_K_PAD = 32                 # pad stem K for sublane-friendly layout

CFG = [(1, 16, 1, 1), (6, 24, 2, 1), (6, 32, 3, 2), (6, 64, 4, 2),
       (6, 96, 3, 1), (6, 160, 3, 2), (6, 320, 1, 1)]


def _tpu_budget():
    """Generation-dependent tile caps / scoped-VMEM budget (conservative fallback)."""
    try:
        vmem = pltpu.get_tpu_info().vmem_capacity_bytes
    except Exception:
        vmem = 64 * 1024 * 1024
    if vmem >= 100 * 1024 * 1024:           # v5e / v6e: 128 MiB VMEM
        return 2048, 16, 96 * 1024 * 1024
    return 1024, 8, 48 * 1024 * 1024        # v7x: 64 MiB VMEM


MAX_TM, MAX_TB, VMEM_LIMIT = _tpu_budget()


def _make_divisible(v, divisor, min_value=None):
    if min_value is None:
        min_value = divisor
    new_v = max(min_value, int(v + divisor / 2) // divisor * divisor)
    if new_v < 0.9 * v:
        new_v += divisor
    return new_v


def _cpad(c):
    return ((c + LANE - 1) // LANE) * LANE


def _pick_rows(m, cap=None):
    """Largest power-of-two divisor of m (<= cap); falls back to m (single tile)."""
    cap = cap or MAX_TM
    t = math.gcd(m, cap)
    return t if t % 8 == 0 else m


def _mtile_spec(shape, index_map, nsteps):
    """M-tiled BlockSpec; requests 3-deep buffering when supported & useful."""
    if nsteps >= 3 and hasattr(pl, "Buffered"):
        try:
            return pl.BlockSpec(shape, index_map, pipeline_mode=pl.Buffered(3))
        except Exception:
            pass
    return pl.BlockSpec(shape, index_map)


# ----------------------------------------------------------------------------
# 1x1 conv (matmul) stats kernel: y = x @ w written once (M-tiled bf16), BN
# batch statistics accumulated in VMEM scratch, (scale, shift) emitted on the
# final step.  Optional fused pre-BN+ReLU on the input (used by the project
# conv to consume the raw depthwise accumulator).
# ----------------------------------------------------------------------------
def _mm_stats_kernel(*refs, inv_m, pre_bn):
    if pre_bn:
        x_ref, w_ref, ssin_ref, g_ref, b_ref, y_ref, ss_ref, sum_ref, sq_ref = refs
    else:
        x_ref, w_ref, g_ref, b_ref, y_ref, ss_ref, sum_ref, sq_ref = refs
    i = pl.program_id(0)

    @pl.when(i == 0)
    def _():
        sum_ref[...] = jnp.zeros_like(sum_ref)
        sq_ref[...] = jnp.zeros_like(sq_ref)

    x = x_ref[...]
    if pre_bn:  # fused BN+ReLU of the previous (depthwise) layer
        xf = x.astype(jnp.float32) * ssin_ref[0:1, :] + ssin_ref[1:2, :]
        x = jnp.maximum(xf, 0.0).astype(jnp.bfloat16)
    y = jnp.dot(x, w_ref[...], preferred_element_type=jnp.float32)
    y_ref[...] = y.astype(y_ref.dtype)
    sum_ref[...] += jnp.sum(y, axis=0, keepdims=True)
    sq_ref[...] += jnp.sum(y * y, axis=0, keepdims=True)

    @pl.when(i == pl.num_programs(0) - 1)
    def _():
        # NOTE: one-pass E[x^2]-E[x]^2 on f32 accumulators; clamp guards cancellation.
        mean = sum_ref[...] * inv_m
        var = jnp.maximum(sq_ref[...] * inv_m - mean * mean, 0.0)
        scale = g_ref[...] * jax.lax.rsqrt(var + EPS)
        ss_ref[0:1, :] = scale
        ss_ref[1:2, :] = b_ref[...] - mean * scale


@lru_cache(maxsize=None)
def _get_mm_stats(M, K, C, TM, pre_bn):
    kernel = functools.partial(_mm_stats_kernel, inv_m=1.0 / M, pre_bn=pre_bn)
    in_specs = [pl.BlockSpec((TM, K), lambda i: (i, 0)),
                pl.BlockSpec((K, C), lambda i: (0, 0))]
    if pre_bn:
        in_specs.append(pl.BlockSpec((2, K), lambda i: (0, 0)))
    in_specs += [pl.BlockSpec((1, C), lambda i: (0, 0)),
                 pl.BlockSpec((1, C), lambda i: (0, 0))]
    return pl.pallas_call(
        kernel,
        grid=(M // TM,),
        in_specs=in_specs,
        out_specs=(pl.BlockSpec((TM, C), lambda i: (i, 0)),
                   pl.BlockSpec((2, C), lambda i: (0, 0))),
        out_shape=(jax.ShapeDtypeStruct((M, C), jnp.bfloat16),
                   jax.ShapeDtypeStruct((2, C), jnp.float32)),
        scratch_shapes=[pltpu.VMEM((1, C), jnp.float32),
                        pltpu.VMEM((1, C), jnp.float32)],
        compiler_params=pltpu.CompilerParams(
            dimension_semantics=("arbitrary",),
            vmem_limit_bytes=VMEM_LIMIT),
    )


def conv_stats(x2d, w, gamma, beta, ss_in=None):
    M, K = x2d.shape
    C = w.shape[1]
    TM = _pick_rows(M)
    fn = _get_mm_stats(M, K, C, TM, ss_in is not None)
    if ss_in is not None:
        return fn(x2d, w, ss_in, gamma, beta)
    return fn(x2d, w, gamma, beta)


# ----------------------------------------------------------------------------
# BN-apply kernel: pure VPU scale/shift (+ReLU, +residual).  The residual may
# itself carry a (scale, shift) pair (shortcut-conv BN applied in-kernel).
# ----------------------------------------------------------------------------
def _bn_apply_kernel(*refs, relu, res_mode):
    if res_mode == 'bn':
        y_ref, ss_ref, r_ref, rss_ref, o_ref = refs
    elif res_mode == 'raw':
        y_ref, ss_ref, r_ref, o_ref = refs
    else:
        y_ref, ss_ref, o_ref = refs
    y = y_ref[...].astype(jnp.float32) * ss_ref[0:1, :] + ss_ref[1:2, :]
    if relu:
        y = jnp.maximum(y, 0.0)
    if res_mode == 'raw':
        y = y + r_ref[...].astype(jnp.float32)
    elif res_mode == 'bn':
        y = y + (r_ref[...].astype(jnp.float32) * rss_ref[0:1, :] + rss_ref[1:2, :])
    o_ref[...] = y.astype(o_ref.dtype)


@lru_cache(maxsize=None)
def _get_bn_apply(M, C, TM, relu, res_mode):
    kernel = functools.partial(_bn_apply_kernel, relu=relu, res_mode=res_mode)
    n = M // TM
    in_specs = [_mtile_spec((TM, C), lambda i: (i, 0), n),
                pl.BlockSpec((2, C), lambda i: (0, 0))]
    if res_mode in ('raw', 'bn'):
        in_specs.append(_mtile_spec((TM, C), lambda i: (i, 0), n))
    if res_mode == 'bn':
        in_specs.append(pl.BlockSpec((2, C), lambda i: (0, 0)))
    return pl.pallas_call(
        kernel,
        grid=(n,),
        in_specs=in_specs,
        out_specs=pl.BlockSpec((TM, C), lambda i: (i, 0)),
        out_shape=jax.ShapeDtypeStruct((M, C), jnp.bfloat16),
        compiler_params=pltpu.CompilerParams(
            dimension_semantics=("parallel",),
            vmem_limit_bytes=VMEM_LIMIT),
    )


def bn_apply(y, ss, *, relu, residual=None, residual_ss=None):
    M, C = y.shape
    TM = _pick_rows(M)
    mode = 'none' if residual is None else ('bn' if residual_ss is not None else 'raw')
    fn = _get_bn_apply(M, C, TM, relu, mode)
    args = [y, ss]
    if residual is not None:
        args.append(residual)
    if residual_ss is not None:
        args.append(residual_ss)
    return fn(*args)


# ----------------------------------------------------------------------------
# 3x3 depthwise conv (pad=1, stride 1/2) stats kernel.  The 9-tap accumulator
# is computed once, written out as bf16 (its BN+ReLU is fused into the next
# project-conv stats kernel), and BN batch statistics are accumulated across
# the batch grid axis.  Grid = (channel blocks [parallel], batch [arbitrary]).
# Stride-2 inputs are phase-decomposed in glue, grouped per channel block so
# every in-kernel slice is unit-stride and 128-lane aligned.
# ----------------------------------------------------------------------------
def _dw_taps(xv, wv, *, stride, hout, wout, cblk):
    xf = xv.astype(jnp.float32)          # single hoisted cast (not per tap)
    wf = wv.astype(jnp.float32)
    acc = None
    for dh in range(3):
        for dw in range(3):
            ph = (dh % stride) * stride + (dw % stride)
            r0 = dh // stride
            q0 = dw // stride
            patch = xf[:, r0:r0 + hout, q0:q0 + wout, ph * cblk:(ph + 1) * cblk]
            term = patch * wf[dh * 3 + dw, :]
            acc = term if acc is None else acc + term
    return acc


def _dw_stats_kernel(x_ref, w_ref, g_ref, b_ref, acc_ref, ss_ref, sum_ref, sq_ref,
                     *, stride, hout, wout, cblk, inv_m):
    ib = pl.program_id(1)

    @pl.when(ib == 0)
    def _():
        sum_ref[...] = jnp.zeros_like(sum_ref)
        sq_ref[...] = jnp.zeros_like(sq_ref)

    acc = _dw_taps(x_ref[...], w_ref[...], stride=stride, hout=hout,
                   wout=wout, cblk=cblk)
    acc_ref[...] = acc.astype(acc_ref.dtype)
    red = jnp.sum(acc, axis=(0, 1))                       # (wout, cblk)
    sum_ref[...] += jnp.sum(red, axis=0, keepdims=True)   # (1, cblk)
    sqr = jnp.sum(acc * acc, axis=(0, 1))
    sq_ref[...] += jnp.sum(sqr, axis=0, keepdims=True)

    @pl.when(ib == pl.num_programs(1) - 1)
    def _():
        mean = sum_ref[...] * inv_m
        var = jnp.maximum(sq_ref[...] * inv_m - mean * mean, 0.0)
        scale = g_ref[...] * jax.lax.rsqrt(var + EPS)
        ss_ref[0:1, :] = scale
        ss_ref[1:2, :] = b_ref[...] - mean * scale


@lru_cache(maxsize=None)
def _get_dw_stats(N, Hq, Wq, C, TCc, s2, TB, hout, wout, stride):
    kernel = functools.partial(_dw_stats_kernel, stride=stride, hout=hout,
                               wout=wout, cblk=TCc, inv_m=1.0 / (N * hout * wout))
    return pl.pallas_call(
        kernel,
        grid=(C // TCc, N // TB),
        in_specs=[pl.BlockSpec((TB, Hq, Wq, s2 * TCc), lambda jc, ib: (ib, 0, 0, jc)),
                  pl.BlockSpec((9, TCc), lambda jc, ib: (0, jc)),
                  pl.BlockSpec((1, TCc), lambda jc, ib: (0, jc)),
                  pl.BlockSpec((1, TCc), lambda jc, ib: (0, jc))],
        out_specs=(pl.BlockSpec((TB, hout, wout, TCc), lambda jc, ib: (ib, 0, 0, jc)),
                   pl.BlockSpec((2, TCc), lambda jc, ib: (0, jc))),
        out_shape=(jax.ShapeDtypeStruct((N, hout, wout, C), jnp.bfloat16),
                   jax.ShapeDtypeStruct((2, C), jnp.float32)),
        scratch_shapes=[pltpu.VMEM((1, TCc), jnp.float32),
                        pltpu.VMEM((1, TCc), jnp.float32)],
        compiler_params=pltpu.CompilerParams(
            dimension_semantics=("parallel", "arbitrary"),
            vmem_limit_bytes=VMEM_LIMIT),
    )


def dw_conv_stats(x, w9, gamma, beta, stride):
    N, H, W, C = x.shape
    hout = (H - 1) // stride + 1
    wout = (W - 1) // stride + 1
    xp = jnp.pad(x, ((0, 0), (1, 1), (1, 1), (0, 0)))
    TCc = C if C <= 256 else (256 if C % 256 == 0 else LANE)
    if stride == 1:
        s2 = 1
        xph = xp
    else:
        # TODO(synk): do the pad + stride-2 deinterleave in-kernel (strided ref
        #             slices) to drop this extra HBM round-trip of the input.
        s2 = stride * stride
        parts = []
        for cb in range(C // TCc):
            for p in range(stride):
                for q in range(stride):
                    parts.append(xp[:, p::stride, q::stride, cb * TCc:(cb + 1) * TCc])
        xph = jnp.concatenate(parts, axis=-1)
    Hq, Wq = xph.shape[1], xph.shape[2]
    TB = math.gcd(N, MAX_TB)
    return _get_dw_stats(N, Hq, Wq, C, TCc, s2, TB, hout, wout, stride)(
        xph, w9, gamma, beta)


# ----------------------------------------------------------------------------
# AvgPool2d(4) + flatten + Linear (batch-tiled, cached)
# ----------------------------------------------------------------------------
def _pool_linear_kernel(x_ref, w_ref, b_ref, o_ref):
    pooled = jnp.mean(x_ref[...].astype(jnp.float32), axis=(1, 2))
    o_ref[...] = jnp.dot(pooled.astype(jnp.bfloat16), w_ref[...],
                         preferred_element_type=jnp.float32) + b_ref[...]


@lru_cache(maxsize=None)
def _get_pool_linear(N, H, W, C, NC, TB):
    return pl.pallas_call(
        _pool_linear_kernel,
        grid=(N // TB,),
        in_specs=[pl.BlockSpec((TB, H, W, C), lambda i: (i, 0, 0, 0)),
                  pl.BlockSpec((C, NC), lambda i: (0, 0)),
                  pl.BlockSpec((1, NC), lambda i: (0, 0))],
        out_specs=pl.BlockSpec((TB, NC), lambda i: (i, 0)),
        out_shape=jax.ShapeDtypeStruct((N, NC), jnp.float32),
        compiler_params=pltpu.CompilerParams(
            dimension_semantics=("parallel",),
            vmem_limit_bytes=VMEM_LIMIT),
    )


def avgpool_linear(x, w, b):
    N, H, W, C = x.shape
    NC = w.shape[1]
    TB = math.gcd(N, 256) if N % 8 == 0 else N
    return _get_pool_linear(N, H, W, C, NC, TB)(x, w, b)


# ----------------------------------------------------------------------------
# Glue: im2col for the stem 3x3 conv, parameter init (padded + bf16), forward
# ----------------------------------------------------------------------------
def _im2col3x3(x):
    # TODO(synk): fold the stem taps in-kernel (3 shifted dots) to avoid this
    #             im2col materialization in HBM.
    N, H, W, C = x.shape
    xp = jnp.pad(x, ((0, 0), (1, 1), (1, 1), (0, 0)))
    cols = [xp[:, dh:dh + H, dw:dw + W, :] for dh in range(3) for dw in range(3)]
    return jnp.concatenate(cols, axis=-1)  # (N,H,W,27); tap-major, matches weights


def init_mobilenetv2_params(key, width_mult=0.25, num_classes=10):
    rn = 4 if width_mult <= 0.25 else 8
    keys = iter(jax.random.split(key, 512))

    def kaiming(shape, fan_out):  # kaiming_normal_(mode='fan_out'), relu gain
        return math.sqrt(2.0 / fan_out) * jax.random.normal(next(keys), shape, jnp.float32)

    def pad2(a, rows, cols):  # zero-pad a 2-D weight and cast to bf16
        return jnp.pad(a, ((0, rows - a.shape[0]), (0, cols - a.shape[1]))).astype(jnp.bfloat16)

    def bn(c, cp):  # gamma=1 / beta=0 on real channels, 0 on the padded tail
        g = jnp.zeros((1, cp), jnp.float32).at[0, :c].set(1.0)
        b = jnp.zeros((1, cp), jnp.float32)
        return (g, b)

    params = {'num_classes': num_classes}
    c0 = _make_divisible(32 * width_mult, rn)
    c0p = _cpad(c0)
    w = kaiming((3, 3, 3, c0), fan_out=c0 * 9).reshape(STEM_K, c0)
    params['conv1_w'] = pad2(w, STEM_K_PAD, c0p)
    params['bn1'] = bn(c0, c0p)

    blocks = []
    in_c, in_cp = c0, c0p
    for expansion, out_c, num_blocks, stride in CFG:
        out_c = _make_divisible(out_c * width_mult, rn)
        out_cp = _cpad(out_c)
        for s in [stride] + [1] * (num_blocks - 1):
            planes = expansion * in_c
            planesp = _cpad(planes)
            bp = {
                'stride': s,
                'w1': pad2(kaiming((in_c, planes), fan_out=planes), in_cp, planesp),
                'bn1': bn(planes, planesp),
                'w2': pad2(kaiming((3, 3, planes), fan_out=planes * 9).reshape(9, planes),
                           9, planesp),
                'bn2': bn(planes, planesp),
                'w3': pad2(kaiming((planes, out_c), fan_out=out_c), planesp, out_cp),
                'bn3': bn(out_c, out_cp),
                'identity': (s == 1 and in_c == out_c),
            }
            if s == 1 and in_c != out_c:
                bp['ws'] = pad2(kaiming((in_c, out_c), fan_out=out_c), in_cp, out_cp)
                bp['bns'] = bn(out_c, out_cp)
            blocks.append(bp)
            in_c, in_cp = out_c, out_cp
    params['blocks'] = blocks

    last = _make_divisible(1280 * max(1.0, width_mult), rn)
    lastp = _cpad(last)
    params['conv2_w'] = pad2(kaiming((in_c, last), fan_out=last), in_cp, lastp)
    params['bn2'] = bn(last, lastp)

    ncp = _cpad(num_classes)
    lin = 0.01 * jax.random.normal(next(keys), (last, num_classes), jnp.float32)
    params['lin_w'] = pad2(lin, lastp, ncp)
    params['lin_b'] = jnp.zeros((1, ncp), jnp.float32)
    return params


def block_forward(x, bp):
    # TODO(synk): fuse expand->depthwise->project into one pallas_call keeping the
    #             expanded activation resident in VMEM with a 1-row halo.
    N, H, W, cinp = x.shape
    planesp = bp['w1'].shape[1]
    outp = bp['w3'].shape[1]
    s = bp['stride']
    x2d = x.reshape(N * H * W, cinp)

    # expand 1x1 conv: matmul once (stats) + elementwise BN/ReLU apply
    y1, ss1 = conv_stats(x2d, bp['w1'], *bp['bn1'])
    h1 = bn_apply(y1, ss1, relu=True)

    # depthwise 3x3: taps once; its BN+ReLU is fused into the project-conv stats
    acc, ss2 = dw_conv_stats(h1.reshape(N, H, W, planesp), bp['w2'], *bp['bn2'], stride=s)
    _, Ho, Wo, _ = acc.shape
    acc2d = acc.reshape(N * Ho * Wo, planesp)

    # project 1x1 conv with fused depthwise BN+ReLU on the input
    y3, ss3 = conv_stats(acc2d, bp['w3'], *bp['bn3'], ss_in=ss2)

    if s == 1:
        if bp['identity']:
            out2d = bn_apply(y3, ss3, relu=False, residual=x2d)
        else:
            # shortcut conv: stats only; its BN is applied to the residual in-kernel
            # TODO(synk): concat ws with w1 to fill the 256-wide MXU on v6e/v7x.
            ysc, sssc = conv_stats(x2d, bp['ws'], *bp['bns'])
            out2d = bn_apply(y3, ss3, relu=False, residual=ysc, residual_ss=sssc)
    else:
        out2d = bn_apply(y3, ss3, relu=False)
    return out2d.reshape(N, Ho, Wo, outp)


def mobilenetv2_forward(x_nchw, params):
    x = jnp.transpose(x_nchw, (0, 2, 3, 1)).astype(jnp.float32)  # NCHW -> NHWC
    N, H, W, _ = x.shape

    # stem: 3x3 conv stride 1 pad 1 (im2col in glue, matmul-stats + BN/ReLU apply)
    patches = _im2col3x3(x)
    patches = jnp.pad(patches, ((0, 0), (0, 0), (0, 0), (0, STEM_K_PAD - STEM_K)))
    xcols = patches.astype(jnp.bfloat16).reshape(N * H * W, STEM_K_PAD)
    c0p = params['conv1_w'].shape[1]
    y0, ss0 = conv_stats(xcols, params['conv1_w'], *params['bn1'])
    h = bn_apply(y0, ss0, relu=True).reshape(N, H, W, c0p)

    for bp in params['blocks']:
        h = block_forward(h, bp)

    N2, H2, W2, Cp = h.shape
    lastp = params['conv2_w'].shape[1]
    yh, ssh = conv_stats(h.reshape(N2 * H2 * W2, Cp), params['conv2_w'], *params['bn2'])
    h = bn_apply(yh, ssh, relu=True).reshape(N2, H2, W2, lastp)

    assert H2 == 4 and W2 == 4  # AvgPool2d(4) consumes the full 4x4 map
    logits = avgpool_linear(h, params['lin_w'], params['lin_b'])
    return logits[:, :params['num_classes']]


if __name__ == "__main__":
    key = jax.random.PRNGKey(0)
    pkey, xkey = jax.random.split(key)
    # CIFAR-style 32x32 RGB input (spatial must be 32 so AvgPool2d(4) + Linear line
    # up); batch=2; width_mult=0.25 keeps channel counts small.
    params = init_mobilenetv2_params(pkey, width_mult=0.25, num_classes=10)
    x = jax.random.normal(xkey, (2, 3, 32, 32), jnp.float32)  # NCHW, like PyTorch
    out = mobilenetv2_forward(x, params)
    out = jax.block_until_ready(out)
    assert out.shape == (2, 10) and out.dtype == jnp.float32
    assert bool(jnp.all(jnp.isfinite(out)))
    print("KERNEL_OK")
</pallas_src>

<mosaic_0001>
module attributes {stable_mosaic.version = 11 : i64} {
  func.func @_mm_stats_kernel(%arg0: i32, %arg1: memref<1024x32xbf16, #tpu.memory_space<vmem>>, %arg2: memref<32x128xbf16, #tpu.memory_space<vmem>>, %arg3: memref<1x128xf32, #tpu.memory_space<vmem>>, %arg4: memref<1x128xf32, #tpu.memory_space<vmem>>, %arg5: memref<1024x128xbf16, #tpu.memory_space<vmem>>, %arg6: memref<2x128xf32, #tpu.memory_space<vmem>>, %arg7: memref<1x128xf32, #tpu.memory_space<vmem>>, %arg8: memref<1x128xf32, #tpu.memory_space<vmem>>) attributes {dimension_semantics = [#tpu.dimension_semantics<arbitrary>], iteration_bounds = array<i64: 2>, scalar_prefetch = 0 : i64, scratch_operands = 2 : i64, tpu.core_type = #tpu.core_type<tc>, window_params = [{transform_indices = @transform_0, window_bounds = array<i64: 1024, 32>}, {pipeline_mode = #tpu.pipeline_mode<synchronous>, transform_indices = @transform_1, window_bounds = array<i64: 32, 128>}, {pipeline_mode = #tpu.pipeline_mode<synchronous>, transform_indices = @transform_2, window_bounds = array<i64: 1, 128>}, {pipeline_mode = #tpu.pipeline_mode<synchronous>, transform_indices = @transform_3, window_bounds = array<i64: 1, 128>}, {transform_indices = @transform_4, window_bounds = array<i64: 1024, 128>}, {pipeline_mode = #tpu.pipeline_mode<synchronous>, transform_indices = @transform_5, window_bounds = array<i64: 2, 128>}]} {
    %c0_i32 = arith.constant 0 : i32
    %0 = arith.cmpi eq, %arg0, %c0_i32 : i32
    %1 = arith.extui %0 : i1 to i32
    %c0_i32_0 = arith.constant 0 : i32
    %2 = arith.cmpi ne, %1, %c0_i32_0 : i32
    scf.if %2 {
      %cst_17 = arith.constant 0.000000e+00 : f32
      %22 = vector.broadcast %cst_17 : f32 to vector<1x128xf32>
      %c0_18 = arith.constant 0 : index
      %c0_19 = arith.constant 0 : index
      %23 = vector.load %arg7[%c0_18, %c0_19] : memref<1x128xf32, #tpu.memory_space<vmem>>, vector<1x128xf32>
      tpu.vector_store %arg7[%c0_18, %c0_19], %22 {strides = array<i32>} : memref<1x128xf32, #tpu.memory_space<vmem>>, vector<1x128xf32>,
      %cst_20 = arith.constant 0.000000e+00 : f32
      %24 = vector.broadcast %cst_20 : f32 to vector<1x128xf32>
      %c0_21 = arith.constant 0 : index
      %c0_22 = arith.constant 0 : index
      %25 = vector.load %arg8[%c0_21, %c0_22] : memref<1x128xf32, #tpu.memory_space<vmem>>, vector<1x128xf32>
      tpu.vector_store %arg8[%c0_21, %c0_22], %24 {strides = array<i32>} : memref<1x128xf32, #tpu.memory_space<vmem>>, vector<1x128xf32>,
    } else {
    }
    %c0 = arith.constant 0 : index
    %c0_1 = arith.constant 0 : index
    %3 = vector.load %arg1[%c0, %c0_1] : memref<1024x32xbf16, #tpu.memory_space<vmem>>, vector<1024x32xbf16>
    %c0_2 = arith.constant 0 : index
    %c0_3 = arith.constant 0 : index
    %4 = vector.load %arg2[%c0_2, %c0_3] : memref<32x128xbf16, #tpu.memory_space<vmem>>, vector<32x128xbf16>
    %cst = arith.constant dense<0.000000e+00> : vector<1024x128xf32>
    %5 = tpu.matmul %3, %4, %cst {dimension_numbers = #tpu.dot_dimension_numbers<[1], [0], [0], [1], [0, 0, 1, 1], [], []>} : vector<1024x32xbf16>, vector<32x128xbf16>, vector<1024x128xf32> -> vector<1024x128xf32>
    %6 = arith.truncf %5 : vector<1024x128xf32> to vector<1024x128xbf16>
    %c0_4 = arith.constant 0 : index
    %c0_5 = arith.constant 0 : index
    %7 = vector.load %arg5[%c0_4, %c0_5] : memref<1024x128xbf16, #tpu.memory_space<vmem>>, vector<1024x128xbf16>
    tpu.vector_store %arg5[%c0_4, %c0_5], %6 {strides = array<i32>} : memref<1024x128xbf16, #tpu.memory_space<vmem>>, vector<1024x128xbf16>,
    %c0_6 = arith.constant 0 : index
    %c0_7 = arith.constant 0 : index
    %8 = vector.load %arg7[%c0_6, %c0_7] : memref<1x128xf32, #tpu.memory_space<vmem>>, vector<1x128xf32>
    %cst_8 = arith.constant dense<0.000000e+00> : vector<128xf32>
    %9 = vector.multi_reduction <add>, %5, %cst_8 [0] : vector<1024x128xf32> to vector<128xf32>
    %10 = vector.shape_cast %9 : vector<128xf32> to vector<1x128xf32>
    %11 = arith.addf %8, %10 : vector<1x128xf32>
    %c0_9 = arith.constant 0 : index
    %c0_10 = arith.constant 0 : index
    %12 = vector.load %arg7[%c0_9, %c0_10] : memref<1x128xf32, #tpu.memory_space<vmem>>, vector<1x128xf32>
    tpu.vector_store %arg7[%c0_9, %c0_10], %11 {strides = array<i32>} : memref<1x128xf32, #tpu.memory_space<vmem>>, vector<1x128xf32>,
    %c0_11 = arith.constant 0 : index
    %c0_12 = arith.constant 0 : index
    %13 = vector.load %arg8[%c0_11, %c0_12] : memref<1x128xf32, #tpu.memory_space<vmem>>, vector<1x128xf32>
    %14 = arith.mulf %5, %5 : vector<1024x128xf32>
    %cst_13 = arith.constant dense<0.000000e+00> : vector<128xf32>
    %15 = vector.multi_reduction <add>, %14, %cst_13 [0] : vector<1024x128xf32> to vector<128xf32>
    %16 = vector.shape_cast %15 : vector<128xf32> to vector<1x128xf32>
    %17 = arith.addf %13, %16 : vector<1x128xf32>
    %c0_14 = arith.constant 0 : index
    %c0_15 = arith.constant 0 : index
    %18 = vector.load %arg8[%c0_14, %c0_15] : memref<1x128xf32, #tpu.memory_space<vmem>>, vector<1x128xf32>
    tpu.vector_store %arg8[%c0_14, %c0_15], %17 {strides = array<i32>} : memref<1x128xf32, #tpu.memory_space<vmem>>, vector<1x128xf32>,
    %c1_i32 = arith.constant 1 : i32
    %19 = arith.cmpi eq, %arg0, %c1_i32 : i32
    %20 = arith.extui %19 : i1 to i32
    %c0_i32_16 = arith.constant 0 : i32
    %21 = arith.cmpi ne, %20, %c0_i32_16 : i32
    scf.if %21 {
      %c0_17 = arith.constant 0 : index
      %c0_18 = arith.constant 0 : index
      %22 = vector.load %arg7[%c0_17, %c0_18] : memref<1x128xf32, #tpu.memory_space<vmem>>, vector<1x128xf32>
      %cst_19 = arith.constant 4.8828125E-4 : f32
      %23 = vector.broadcast %cst_19 : f32 to vector<1x128xf32>
      %24 = arith.mulf %22, %23 : vector<1x128xf32>
      %c0_20 = arith.constant 0 : index
      %c0_21 = arith.constant 0 : index
      %25 = vector.load %arg8[%c0_20, %c0_21] : memref<1x128xf32, #tpu.memory_space<vmem>>, vector<1x128xf32>
      %cst_22 = arith.constant 4.8828125E-4 : f32
      %26 = vector.broadcast %cst_22 : f32 to vector<1x128xf32>
      %27 = arith.mulf %25, %26 : vector<1x128xf32>
      %28 = arith.mulf %24, %24 : vector<1x128xf32>
      %29 = arith.subf %27, %28 : vector<1x128xf32>
      %cst_23 = arith.constant 0.000000e+00 : f32
      %30 = vector.broadcast %cst_23 : f32 to vector<1x128xf32>
      %31 = arith.maximumf %29, %30 : vector<1x128xf32>
      %c0_24 = arith.constant 0 : index
      %c0_25 = arith.constant 0 : index
      %32 = vector.load %arg3[%c0_24, %c0_25] : memref<1x128xf32, #tpu.memory_space<vmem>>, vector<1x128xf32>
      %cst_26 = arith.constant 9.99999974E-6 : f32
      %33 = vector.broadcast %cst_26 : f32 to vector<1x128xf32>
      %34 = arith.addf %31, %33 : vector<1x128xf32>
      %35 = math.rsqrt %34 : vector<1x128xf32>
      %36 = arith.mulf %32, %35 : vector<1x128xf32>
      %c0_27 = arith.constant 0 : index
      %c0_28 = arith.constant 0 : index
      %37 = vector.load %arg6[%c0_27, %c0_28] : memref<2x128xf32, #tpu.memory_space<vmem>>, vector<1x128xf32>
      tpu.vector_store %arg6[%c0_27, %c0_28], %36 {strides = array<i32>} : memref<2x128xf32, #tpu.memory_space<vmem>>, vector<1x128xf32>,
      %c0_29 = arith.constant 0 : index
      %c0_30 = arith.constant 0 : index
      %38 = vector.load %arg4[%c0_29, %c0_30] : memref<1x128xf32, #tpu.memory_space<vmem>>, vector<1x128xf32>
      %39 = arith.mulf %24, %36 : vector<1x128xf32>
      %40 = arith.subf %38, %39 : vector<1x128xf32>
      %c1 = arith.constant 1 : index
      %c0_31 = arith.constant 0 : index
      %41 = vector.load %arg6[%c1, %c0_31] : memref<2x128xf32, #tpu.memory_space<vmem>>, vector<1x128xf32>
      tpu.vector_store %arg6[%c1, %c0_31], %40 {strides = array<i32>} : memref<2x128xf32, #tpu.memory_space<vmem>>, vector<1x128xf32>,
    } else {
    }
    return
  }
  func.func @transform_0(%arg0: i32) -> (i32, i32) {
    %c0_i32 = arith.constant 0 : i32
    %c0_i32_0 = arith.constant 0 : i32
    return %arg0, %c0_i32 : i32, i32
  }
  func.func @transform_1(%arg0: i32) -> (i32, i32) {
    %c0_i32 = arith.constant 0 : i32
    %c0_i32_0 = arith.constant 0 : i32
    %c0_i32_1 = arith.constant 0 : i32
    return %c0_i32, %c0_i32_0 : i32, i32
  }
  func.func @transform_2(%arg0: i32) -> (i32, i32) {
    %c0_i32 = arith.constant 0 : i32
    %c0_i32_0 = arith.constant 0 : i32
    %c0_i32_1 = arith.constant 0 : i32
    return %c0_i32, %c0_i32_0 : i32, i32
  }
  func.func @transform_3(%arg0: i32) -> (i32, i32) {
    %c0_i32 = arith.constant 0 : i32
    %c0_i32_0 = arith.constant 0 : i32
    %c0_i32_1 = arith.constant 0 : i32
    return %c0_i32, %c0_i32_0 : i32, i32
  }
  func.func @transform_4(%arg0: i32) -> (i32, i32) {
    %c0_i32 = arith.constant 0 : i32
    %c0_i32_0 = arith.constant 0 : i32
    return %arg0, %c0_i32 : i32, i32
  }
  func.func @transform_5(%arg0: i32) -> (i32, i32) {
    %c0_i32 = arith.constant 0 : i32
    %c0_i32_0 = arith.constant 0 : i32
    %c0_i32_1 = arith.constant 0 : i32
    return %c0_i32, %c0_i32_0 : i32, i32
  }
}

</mosaic_0001>

<bundles_post_ra>
// kernel: tpu_custom_call.1
= control target key start
LH: loop header
LB: loop body
LE: loop exit
PB: predicated region body
PF: predicated region fallthrough
CT: control target
= control target key end

     0   :  { %11 = vsyncpa [#allocation5], 0  ;;  %s4551_s0 = inlined_call_operand.vmem [shape: bf16[2048,32], index: 0, kind: input, shape index: {}]   ;;  %s4552_s1 = inlined_call_operand.vmem [shape: bf16[32,128], index: 1, kind: input, shape index: {}]   ;;  %s4553_s2 = inlined_call_operand.vmem [shape: f32[1,128], index: 2, kind: input, shape index: {}]   ;;  %s4554_s3 = inlined_call_operand.vmem [shape: f32[1,128], index: 3, kind: input, shape index: {}]   ;;  %s4555_s4 = inlined_call_operand.hbm [shape: bf16[2048,128], index: 4, kind: output, shape index: {0}]   ;;  %s4556_s5 = inlined_call_operand.hbm [shape: f32[2,128], index: 5, kind: output, shape index: {1}]  }
   0x1   :  { %13 = vsyncpa [#allocation5 + $0x1], 0 }
   0x2   :  { %14 = vsyncpa [#allocation7], 0  ;;  %s3826_s18 = smov 0   ;;  %s3828_s19 = smov 0  }
   0x3   :  { %s3830_s20 = smov 0   ;;  %s3832_s21 = smov 0  }
   0x4 LB: > { %s3847_s22 = sadd.s32 4294967295, %s3789_s21   ;;  %s2592_s23 = sadd.s32 4294967294, %s3789_s21   ;;  %s3789_s21 = sphi %s3832_s21, %s4582_s21   ;;  %s3785_s20 = sphi %s3830_s20, %s4581_s20   ;;  %s3781_s19 = sphi %s3828_s19, %s4580_s19   ;;  %s3777_s18 = sphi %s3826_s18, %s4579_s18  }
   0x5   : > { %s3851_s24 = sadd.s32 1, %s3789_s21   ;;  %s116_s25 = sadd.s32 1, %s3785_s20 }
   0x6   : > { %s113_s26 = ssub.s32 %s3789_s21, %s3851_s24  ;;  %p126_p0 = scmp.ne.s32.totalorder %s3785_s20, %s3781_s19 }
   0x7   : > { %p114_p1 = scmp.eq.s32.totalorder %s113_s26, 0  ;;  %p127_p2 = scmp.eq.s32.totalorder %s3847_s22, 1 }
   0x8   : > { %p132_p3 = scmp.ne.s32.totalorder %s3781_s19, %s3777_s18  ;;  %p133_p4 = scmp.eq.s32.totalorder %s2592_s23, 1 }
   0x9   : > { %s3862_s27 = scalar_select %p114_p1, %s3785_s20, %s116_s25  }
   0xa   : > { %p3866_p5 = por %p127_p2, %p126_p0  ;;  %p3870_p6 = por %p133_p4, %p132_p3 }
   0xb   : > { %p2595_p7 = scmp.ge.s32.totalorder %s3789_s21, 1  ;;  %p190_p8 = scmp.lt.s32.totalorder %s3789_s21, 3 }
   0xd   : > { %p191_p9 = pnand %p2595_p7, %p190_p8 }
   0xf   : > { %194 = sbr.rel (%p191_p9) target bundleno = 611 (0x263), region = 36 }
  0x16   : > { %s213_s30 = sand.u32 1, %s3781_s19   ;;  %s2597_s6 = sshll.u32 %s3847_s22, 7 }
  0x17   : > { %s2596_s7 = sshll.u32 %s213_s30, 9  ;;  %p219_p10 = scmp.lt.s32.totalorder %s2597_s6, 255 }
  0x18   : > { %s3885_s12 = scalar_lea.vmem [#allocation4], %s2596_s7  ;;  %p2599_p11 = scmp.ne.s32.totalorder %s3847_s22, 0 }
  0x19   : > { %s4584_s6 = smov (!%p219_p10, %s2597_s6), 255  ;;  %v3791_v0 = vmov (!%p2599_p11), 0.0  }
  0x1a   : > { %s2598_s8 = sshll.u32 %s4584_s6, 2  ;;  %229 = sbr.rel (%p2599_p11) target bundleno = 33 (0x21), region = 40  ;;  %230 = vst [vmem:[#allocation2] sm:$0x1] (!%p2599_p11), %v3791_v0  ;;  %231 = vst [vmem:[#allocation3] sm:$0x1] (!%p2599_p11), %v3791_v0 }
  0x1b   : > { %s3883_s11 = scalar_lea.vmem %s4551_s0, %s2598_s8 }
  0x21 PF: > { %v3629_v1 = vld [vmem:[%s4552_s1] sm:$0xff]   ;;  %v3630_v2 = vld [vmem:[%s4552_s1 + $0x8] sm:$0xff]   ;;  %vm696_vm0 = vcmask 261120   ;;  %v3633_v5 = vld [vmem:[%s3883_s11 + $0x10] sm:$0xff]   ;;  %p2858_p12 = scmp.ne.s32.totalorder %s3847_s22, 1 }
  0x22   : > { %3444 = vmatprep.subr.bf16.mxu0 %v3629_v1  ;;  %v3631_v3 = vld [vmem:[%s3883_s11] sm:$0xff]   ;;  %3576 = vmatprep.subr.bf16.mxu1 %v3629_v1  ;;  %v3632_v4 = vld [vmem:[%s3883_s11 + $0x8] sm:$0xff]   ;;  %v3634_v6 = vld [vmem:[%s3883_s11 + $0x18] sm:$0xff]  }
  0x23   : > { %3445 = vmatpush3.bf16.msra.mxu0 %v3629_v1  ;;  %3578 = vmatpush3.bf16.msra.mxu1 %v3629_v1  ;;  %v3635_v7 = vld [vmem:[%s3883_s11 + $0x20] sm:$0xff]   ;;  %v3636_v8 = vld [vmem:[%s3883_s11 + $0x28] sm:$0xff]   ;;  %v3637_v9 = vld [vmem:[%s3883_s11 + $0x30] sm:$0xff]  }
  0x24   : > { %3446 = vmatprep.subr.bf16.mxu0 %v3630_v2  ;;  %3448 = vmatprep.mubr.msk.bf16.mxu0 %vm696_vm0, %v3631_v3  ;;  %v3638_v10 = vld [vmem:[%s3883_s11 + $0x38] sm:$0xff]   ;;  %v3639_v11 = vld [vmem:[%s3883_s11 + $0x40] sm:$0xff]   ;;  %v3664_v13 = vld [vmem:[%s3883_s11 + $0x108] sm:$0xff]  }
  0x25   : > { %3577 = vmatprep.subr.bf16.mxu1 %v3630_v2  ;;  %v3663_v12 = vld [vmem:[%s3883_s11 + $0x100] sm:$0xff]   ;;  %v3665_v14 = vld [vmem:[%s3883_s11 + $0x110] sm:$0xff]   ;;  %v3640_v15 = vld [vmem:[%s3883_s11 + $0x48] sm:$0xff]  }
  0x26   : > { %3512 = vmatprep.mubr.msk.bf16.mxu1 %vm696_vm0, %v3663_v12  ;;  %v3641_v16 = vld [vmem:[%s3883_s11 + $0x50] sm:$0xff]   ;;  %v3666_v17 = vld [vmem:[%s3883_s11 + $0x118] sm:$0xff]   ;;  %v3667_v18 = vld [vmem:[%s3883_s11 + $0x120] sm:$0xff]  }
  0x27   : > { %3447 = vmatpush3.bf16.msra.mxu0 %v3630_v2  ;;  %3579 = vmatpush3.bf16.msra.mxu1 %v3630_v2  ;;  %v3642_v19 = vld [vmem:[%s3883_s11 + $0x58] sm:$0xff]   ;;  %v3643_v20 = vld [vmem:[%s3883_s11 + $0x60] sm:$0xff]   ;;  %v3668_v21 = vld [vmem:[%s3883_s11 + $0x128] sm:$0xff]  }
  0x28   : > { %v3669_v22 = vld [vmem:[%s3883_s11 + $0x130] sm:$0xff]   ;;  %v3644_v23 = vld [vmem:[%s3883_s11 + $0x68] sm:$0xff]   ;;  %v3670_v25 = vld [vmem:[%s3883_s11 + $0x138] sm:$0xff]  }
  0x29   : > { %v3645_v24 = vld [vmem:[%s3883_s11 + $0x70] sm:$0xff]   ;;  %v3671_v26 = vld [vmem:[%s3883_s11 + $0x140] sm:$0xff]   ;;  %v3646_v27 = vld [vmem:[%s3883_s11 + $0x78] sm:$0xff]  }
  0x2a   : > { %3449 = vmatmul.mubr.msk.bf16.vlgmr.msra.gmra.mrb[0].mxu0 %vm696_vm0, %v3632_v4  ;;  %3513 = vmatmul.mubr.msk.bf16.vlgmr.msra.gmra.mrb[0].mxu1 %vm696_vm0, %v3664_v13  ;;  %v3647_v28 = vld [vmem:[%s3883_s11 + $0x80] sm:$0xff]   ;;  %v3672_v29 = vld [vmem:[%s3883_s11 + $0x148] sm:$0xff]   ;;  %v3673_v30 = vld [vmem:[%s3883_s11 + $0x150] sm:$0xff]  }
  0x2b   : > { %3452 = vmatprep.mubr.msk.bf16.mxu0 %vm696_vm0, %v3633_v5  ;;  %3516 = vmatprep.mubr.msk.bf16.mxu1 %vm696_vm0, %v3665_v14  ;;  %v3648_v31 = vld [vmem:[%s3883_s11 + $0x88] sm:$0xff]   ;;  %v3649_v32 = vld [vmem:[%s3883_s11 + $0x90] sm:$0xff]   ;;  %v3674_v33 = vld [vmem:[%s3883_s11 + $0x158] sm:$0xff]  }
  0x2c   : > { %v3675_v34 = vld [vmem:[%s3883_s11 + $0x160] sm:$0xff]   ;;  %v3650_v35 = vld [vmem:[%s3883_s11 + $0x98] sm:$0xff]   ;;  %v3676_v37 = vld [vmem:[%s3883_s11 + $0x168] sm:$0xff]  }
  0x2d   : > { %v3651_v36 = vld [vmem:[%s3883_s11 + $0xa0] sm:$0xff]   ;;  %v3677_v38 = vld [vmem:[%s3883_s11 + $0x170] sm:$0xff]   ;;  %v3652_v39 = vld [vmem:[%s3883_s11 + $0xa8] sm:$0xff]  }
  0x2e   : > { %v3653_v40 = vld [vmem:[%s3883_s11 + $0xb0] sm:$0xff]   ;;  %v3678_v41 = vld [vmem:[%s3883_s11 + $0x178] sm:$0xff]   ;;  %v3679_v42 = vld [vmem:[%s3883_s11 + $0x180] sm:$0xff]  }
  0x2f   : > { %v3654_v43 = vld [vmem:[%s3883_s11 + $0xb8] sm:$0xff]   ;;  %v3655_v44 = vld [vmem:[%s3883_s11 + $0xc0] sm:$0xff]   ;;  %v3680_v45 = vld [vmem:[%s3883_s11 + $0x188] sm:$0xff]  }
  0x30   : > { %v3681_v46 = vld [vmem:[%s3883_s11 + $0x190] sm:$0xff]   ;;  %v3656_v47 = vld [vmem:[%s3883_s11 + $0xc8] sm:$0xff]   ;;  %v3682_v49 = vld [vmem:[%s3883_s11 + $0x198] sm:$0xff]  }
  0x31   : > { %v3657_v48 = vld [vmem:[%s3883_s11 + $0xd0] sm:$0xff]   ;;  %v3683_v50 = vld [vmem:[%s3883_s11 + $0x1a0] sm:$0xff]   ;;  %v3658_v51 = vld [vmem:[%s3883_s11 + $0xd8] sm:$0xff]  }
  0x32   : > { %3453 = vmatmul.mubr.msk.bf16.gmra.mrb[4].mxu0 %vm696_vm0, %v3634_v6  ;;  %3517 = vmatmul.mubr.msk.bf16.gmra.mrb[4].mxu1 %vm696_vm0, %v3666_v17  ;;  %v3659_v52 = vld [vmem:[%s3883_s11 + $0xe0] sm:$0xff]   ;;  %v3684_v53 = vld [vmem:[%s3883_s11 + $0x1a8] sm:$0xff]   ;;  %v3685_v54 = vld [vmem:[%s3883_s11 + $0x1b0] sm:$0xff]  }
  0x33   : > { %3456 = vmatprep.mubr.msk.bf16.mxu0 %vm696_vm0, %v3635_v7  ;;  %3520 = vmatprep.mubr.msk.bf16.mxu1 %vm696_vm0, %v3667_v18  ;;  %v3660_v55 = vld [vmem:[%s3883_s11 + $0xe8] sm:$0xff]   ;;  %v3661_v56 = vld [vmem:[%s3883_s11 + $0xf0] sm:$0xff]   ;;  %v3686_v57 = vld [vmem:[%s3883_s11 + $0x1b8] sm:$0xff]  }
  0x34   : > { %v3687_v58 = vld [vmem:[%s3883_s11 + $0x1c0] sm:$0xff]   ;;  %v3662_v59 = vld [vmem:[%s3883_s11 + $0xf8] sm:$0xff]   ;;  %v3688_v60 = vld [vmem:[%s3883_s11 + $0x1c8] sm:$0xff]  }
  0x35   : > { %v3689_v61 = vld [vmem:[%s3883_s11 + $0x1d0] sm:$0xff]   ;;  %v3690_v62 = vld [vmem:[%s3883_s11 + $0x1d8] sm:$0xff]   ;;  %v3691_v63 = vld [vmem:[%s3883_s11 + $0x1e0] sm:$0xff]  }
  0x36   : > { %v3692_v0 = vld [vmem:[%s3883_s11 + $0x1e8] sm:$0xff]   ;;  %v3693_v1 = vld [vmem:[%s3883_s11 + $0x1f0] sm:$0xff]   ;;  %v3694_v2 = vld [vmem:[%s3883_s11 + $0x1f8] sm:$0xff]  }
  0x3a   : > { %3457 = vmatmul.mubr.msk.bf16.gmra.mrb[8].mxu0 %vm696_vm0, %v3636_v8  ;;  %3521 = vmatmul.mubr.msk.bf16.gmra.mrb[8].mxu1 %vm696_vm0, %v3668_v21 }
  0x3b   : > { %3460 = vmatprep.mubr.msk.bf16.mxu0 %vm696_vm0, %v3637_v9  ;;  %3524 = vmatprep.mubr.msk.bf16.mxu1 %vm696_vm0, %v3669_v22 }
  0x42   : > { %3461 = vmatmul.mubr.msk.bf16.gmra.mrb[12].mxu0 %vm696_vm0, %v3638_v10  ;;  %3525 = vmatmul.mubr.msk.bf16.gmra.mrb[12].mxu1 %vm696_vm0, %v3670_v25 }
  0x43   : > { %3464 = vmatprep.mubr.msk.bf16.mxu0 %vm696_vm0, %v3639_v11  ;;  %3528 = vmatprep.mubr.msk.bf16.mxu1 %vm696_vm0, %v3671_v26 }
  0x4a   : > { %3465 = vmatmul.mubr.msk.bf16.gmra.mrb[16].mxu0 %vm696_vm0, %v3640_v15  ;;  %3529 = vmatmul.mubr.msk.bf16.gmra.mrb[16].mxu1 %vm696_vm0, %v3672_v29 }
  0x4b   : > { %3468 = vmatprep.mubr.msk.bf16.mxu0 %vm696_vm0, %v3641_v16  ;;  %3532 = vmatprep.mubr.msk.bf16.mxu1 %vm696_vm0, %v3673_v30 }
  0x52   : > { %3469 = vmatmul.mubr.msk.bf16.gmra.mrb[20].mxu0 %vm696_vm0, %v3642_v19  ;;  %3533 = vmatmul.mubr.msk.bf16.gmra.mrb[20].mxu1 %vm696_vm0, %v3674_v33 }
  0x53   : > { %3472 = vmatprep.mubr.msk.bf16.mxu0 %vm696_vm0, %v3643_v20  ;;  %3536 = vmatprep.mubr.msk.bf16.mxu1 %vm696_vm0, %v3675_v34 }
  0x5a   : > { %3473 = vmatmul.mubr.msk.bf16.gmra.mrb[24].mxu0 %vm696_vm0, %v3644_v23  ;;  %3537 = vmatmul.mubr.msk.bf16.gmra.mrb[24].mxu1 %vm696_vm0, %v3676_v37 }
  0x5b   : > { %3476 = vmatprep.mubr.msk.bf16.mxu0 %vm696_vm0, %v3645_v24  ;;  %3540 = vmatprep.mubr.msk.bf16.mxu1 %vm696_vm0, %v3677_v38 }
  0x62   : > { %3477 = vmatmul.mubr.msk.bf16.gmra.mrb[28].mxu0 %vm696_vm0, %v3646_v27  ;;  %3541 = vmatmul.mubr.msk.bf16.gmra.mrb[28].mxu1 %vm696_vm0, %v3678_v41 }
  0x63   : > { %3480 = vmatprep.mubr.msk.bf16.mxu0 %vm696_vm0, %v3647_v28  ;;  %3544 = vmatprep.mubr.msk.bf16.mxu1 %vm696_vm0, %v3679_v42 }
  0x6a   : > { %3481 = vmatmul.mubr.msk.bf16.gmra.mrb[32].mxu0 %vm696_vm0, %v3648_v31  ;;  %3545 = vmatmul.mubr.msk.bf16.gmra.mrb[32].mxu1 %vm696_vm0, %v3680_v45 }
  0x6b   : > { %3484 = vmatprep.mubr.msk.bf16.mxu0 %vm696_vm0, %v3649_v32  ;;  %3548 = vmatprep.mubr.msk.bf16.mxu1 %vm696_vm0, %v3681_v46 }
  0x72   : > { %3485 = vmatmul.mubr.msk.bf16.gmra.mrb[36].mxu0 %vm696_vm0, %v3650_v35  ;;  %3549 = vmatmul.mubr.msk.bf16.gmra.mrb[36].mxu1 %vm696_vm0, %v3682_v49 }
  0x73   : > { %3488 = vmatprep.mubr.msk.bf16.mxu0 %vm696_vm0, %v3651_v36  ;;  %3552 = vmatprep.mubr.msk.bf16.mxu1 %vm696_vm0, %v3683_v50 }
  0x7a   : > { %3489 = vmatmul.mubr.msk.bf16.gmra.mrb[40].mxu0 %vm696_vm0, %v3652_v39  ;;  %3553 = vmatmul.mubr.msk.bf16.gmra.mrb[40].mxu1 %vm696_vm0, %v3684_v53 }
  0x7b   : > { %3492 = vmatprep.mubr.msk.bf16.mxu0 %vm696_vm0, %v3653_v40  ;;  %3556 = vmatprep.mubr.msk.bf16.mxu1 %vm696_vm0, %v3685_v54 }
  0x82   : > { %3493 = vmatmul.mubr.msk.bf16.gmra.mrb[44].mxu0 %vm696_vm0, %v3654_v43  ;;  %3557 = vmatmul.mubr.msk.bf16.gmra.mrb[44].mxu1 %vm696_vm0, %v3686_v57 }
  0x83   : > { %3496 = vmatprep.mubr.msk.bf16.mxu0 %vm696_vm0, %v3655_v44  ;;  %3560 = vmatprep.mubr.msk.bf16.mxu1 %vm696_vm0, %v3687_v58 }
  0x8a   : > { %3497 = vmatmul.mubr.msk.bf16.gmra.mrb[48].mxu0 %vm696_vm0, %v3656_v47  ;;  %3561 = vmatmul.mubr.msk.bf16.gmra.mrb[48].mxu1 %vm696_vm0, %v3688_v60 }
  0x8b   : > { %3500 = vmatprep.mubr.msk.bf16.mxu0 %vm696_vm0, %v3657_v48  ;;  %3564 = vmatprep.mubr.msk.bf16.mxu1 %vm696_vm0, %v3689_v61 }
  0x92   : > { %3501 = vmatmul.mubr.msk.bf16.gmra.mrb[52].mxu0 %vm696_vm0, %v3658_v51  ;;  %3565 = vmatmul.mubr.msk.bf16.gmra.mrb[52].mxu1 %vm696_vm0, %v3690_v62 }
  0x93   : > { %3504 = vmatprep.mubr.msk.bf16.mxu0 %vm696_vm0, %v3659_v52  ;;  %3568 = vmatprep.mubr.msk.bf16.mxu1 %vm696_vm0, %v3691_v63 }
  0x9a   : > { %3505 = vmatmul.mubr.msk.bf16.gmra.mrb[56].mxu0 %vm696_vm0, %v3660_v55  ;;  %3569 = vmatmul.mubr.msk.bf16.gmra.mrb[56].mxu1 %vm696_vm0, %v3692_v0 }
  0x9b   : > { %3508 = vmatprep.mubr.msk.bf16.mxu0 %vm696_vm0, %v3661_v56  ;;  %3572 = vmatprep.mubr.msk.bf16.mxu1 %vm696_vm0, %v3693_v1 }
  0xa2   : > { %3509 = vmatmul.mubr.msk.bf16.gmra.mrb[60].mxu0 %vm696_vm0, %v3662_v59  ;;  %3573 = vmatmul.mubr.msk.bf16.gmra.mrb[60].mxu1 %vm696_vm0, %v3694_v2 }
  0xfd   : > { %v3450_v3 = vpop.f32.mrb[0].mxu0  ;;  %v4028_v62 = vpop.f32.mrb[0].mxu1 }
  0xfe   : > { %v923_v4 = vpop.f32.mrb[1].mxu0  ;;  %v2213_v12 = vmul.f32 %v3450_v3, %v3450_v3 }
  0xff   : > { %v3451_v5 = vpop.f32.mrb[2].mxu0  ;;  %v2211_v8 = vmul.f32 %v923_v4, %v923_v4 }
 0x100   : > { %v3003_v6 = vpack.c.bf16 %v3451_v5, %v3450_v3  ;;  %v926_v7 = vpop.f32.mrb[3].mxu0  ;;  %v2214_v15 = vmul.f32 %v3451_v5, %v3451_v5 }
 0x101   : > { %v2998_v9 = vpack.c.bf16 %v926_v7, %v923_v4  ;;  %v2075_v10 = vadd.f32 %v926_v7, %v923_v4  ;;  %v2212_v11 = vmul.f32 %v926_v7, %v926_v7 }
 0x102   : > { %3315 = vst [vmem:[%s3885_s12 + $0x8] sm:$0xff] %v3003_v6  }
 0x103   : > { %2999 = vst [vmem:[%s3885_s12] sm:$0xff] %v2998_v9   ;;  %v2076_v13 = vadd.f32 %v3450_v3, %v2075_v10  ;;  %v2339_v14 = vadd.f32 %v2212_v11, %v2211_v8  ;;  %v4030_v3 = vpop.f32.mrb[1].mxu1 }
 0x104   : > { %v4033_v4 = vpop.f32.mrb[2].mxu1 }
 0x105   : > { %v2340_v16 = vadd.f32 %v2339_v14, %v2213_v12  ;;  %v3454_v17 = vpop.f32.mrb[4].mxu0  ;;  %v2077_v18 = vadd.f32 %v3451_v5, %v2076_v13  ;;  %v3163_v8 = vpack.c.bf16 %v4033_v4, %v4028_v62  ;;  %v4038_v9 = vpop.f32.mrb[3].mxu1 }
 0x106   : > { %v939_v19 = vpop.f32.mrb[5].mxu0  ;;  %v2217_v30 = vmul.f32 %v3454_v17, %v3454_v17  ;;  %v3158_v10 = vpack.c.bf16 %v4038_v9, %v4030_v3 }
 0x107   : > { %v2078_v20 = vadd.f32 %v2077_v18, %v939_v19  ;;  %v2215_v21 = vmul.f32 %v939_v19, %v939_v19  ;;  %v2341_v22 = vadd.f32 %v2340_v16, %v2214_v15  ;;  %v3455_v23 = vpop.f32.mrb[6].mxu0  ;;  %3347 = vst [vmem:[%s3885_s12 + $0x108] sm:$0xff] %v3163_v8  }
 0x108   : > { %v3013_v24 = vpack.c.bf16 %v3455_v23, %v3454_v17  ;;  %v942_v25 = vpop.f32.mrb[7].mxu0  ;;  %v2218_v33 = vmul.f32 %v3455_v23, %v3455_v23  ;;  %3346 = vst [vmem:[%s3885_s12 + $0x100] sm:$0xff] %v3158_v10  }
 0x109   : > { %v2342_v26 = vadd.f32 %v2341_v22, %v2215_v21  ;;  %v3008_v27 = vpack.c.bf16 %v942_v25, %v939_v19  ;;  %v2079_v28 = vadd.f32 %v2078_v20, %v942_v25  ;;  %v2216_v29 = vmul.f32 %v942_v25, %v942_v25  ;;  %v4044_v22 = vpop.f32.mrb[4].mxu1 }
 0x10a   : > { %3317 = vst [vmem:[%s3885_s12 + $0x18] sm:$0xff] %v3013_v24  }
 0x10b   : > { %3316 = vst [vmem:[%s3885_s12 + $0x10] sm:$0xff] %v3008_v27   ;;  %v2080_v31 = vadd.f32 %v3454_v17, %v2079_v28  ;;  %v2343_v32 = vadd.f32 %v2342_v26, %v2216_v29  ;;  %v4046_v27 = vpop.f32.mrb[5].mxu1 }
 0x10c   : > { %v4049_v28 = vpop.f32.mrb[6].mxu1 }
 0x10d   : > { %v2344_v34 = vadd.f32 %v2343_v32, %v2217_v30  ;;  %v3458_v35 = vpop.f32.mrb[8].mxu0  ;;  %v2081_v36 = vadd.f32 %v3455_v23, %v2080_v31  ;;  %v3173_v32 = vpack.c.bf16 %v4049_v28, %v4044_v22 }
 0x10e   : > { %v955_v37 = vpop.f32.mrb[9].mxu0  ;;  %v2221_v48 = vmul.f32 %v3458_v35, %v3458_v35 }
 0x10f   : > { %v2082_v38 = vadd.f32 %v2081_v36, %v955_v37  ;;  %v2219_v39 = vmul.f32 %v955_v37, %v955_v37  ;;  %v2345_v40 = vadd.f32 %v2344_v34, %v2218_v33  ;;  %v3459_v41 = vpop.f32.mrb[10].mxu0  ;;  %v4054_v33 = vpop.f32.mrb[7].mxu1  ;;  %3349 = vst [vmem:[%s3885_s12 + $0x118] sm:$0xff] %v3173_v32  }
 0x110   : > { %v3023_v42 = vpack.c.bf16 %v3459_v41, %v3458_v35  ;;  %v958_v43 = vpop.f32.mrb[11].mxu0  ;;  %v2222_v51 = vmul.f32 %v3459_v41, %v3459_v41  ;;  %v3168_v34 = vpack.c.bf16 %v4054_v33, %v4046_v27 }
 0x111   : > { %v2346_v44 = vadd.f32 %v2345_v40, %v2219_v39  ;;  %v3018_v45 = vpack.c.bf16 %v958_v43, %v955_v37  ;;  %v2083_v46 = vadd.f32 %v2082_v38, %v958_v43  ;;  %v2220_v47 = vmul.f32 %v958_v43, %v958_v43 }
 0x112   : > { %3319 = vst [vmem:[%s3885_s12 + $0x28] sm:$0xff] %v3023_v42   ;;  %3348 = vst [vmem:[%s3885_s12 + $0x110] sm:$0xff] %v3168_v34  }
 0x113   : > { %3318 = vst [vmem:[%s3885_s12 + $0x20] sm:$0xff] %v3018_v45   ;;  %v2084_v49 = vadd.f32 %v3458_v35, %v2083_v46  ;;  %v2347_v50 = vadd.f32 %v2346_v44, %v2220_v47  ;;  %v4060_v46 = vpop.f32.mrb[8].mxu1 }
 0x115   : > { %v2348_v52 = vadd.f32 %v2347_v50, %v2221_v48  ;;  %v3462_v53 = vpop.f32.mrb[12].mxu0  ;;  %v2085_v54 = vadd.f32 %v3459_v41, %v2084_v49 }
 0x116   : > { %v971_v55 = vpop.f32.mrb[13].mxu0  ;;  %v2225_v5 = vmul.f32 %v3462_v53, %v3462_v53 }
 0x117   : > { %v2086_v56 = vadd.f32 %v2085_v54, %v971_v55  ;;  %v2223_v57 = vmul.f32 %v971_v55, %v971_v55  ;;  %v2349_v58 = vadd.f32 %v2348_v52, %v2222_v51  ;;  %v3463_v59 = vpop.f32.mrb[14].mxu0  ;;  %v4062_v51 = vpop.f32.mrb[9].mxu1 }
 0x118   : > { %v3033_v60 = vpack.c.bf16 %v3463_v59, %v3462_v53  ;;  %v974_v61 = vpop.f32.mrb[15].mxu0  ;;  %v2226_v11 = vmul.f32 %v3463_v59, %v3463_v59  ;;  %v4065_v52 = vpop.f32.mrb[10].mxu1 }
 0x119   : > { %v2350_v63 = vadd.f32 %v2349_v58, %v2223_v57  ;;  %v3028_v0 = vpack.c.bf16 %v974_v61, %v971_v55  ;;  %v2087_v1 = vadd.f32 %v2086_v56, %v974_v61  ;;  %v2224_v2 = vmul.f32 %v974_v61, %v974_v61  ;;  %v4070_v57 = vpop.f32.mrb[11].mxu1 }
 0x11a   : > { %3321 = vst [vmem:[%s3885_s12 + $0x38] sm:$0xff] %v3033_v60   ;;  %v3183_v56 = vpack.c.bf16 %v4065_v52, %v4060_v46  ;;  %v3178_v58 = vpack.c.bf16 %v4070_v57, %v4062_v51  ;;  %v4076_v10 = vpop.f32.mrb[12].mxu1 }
 0x11b   : > { %3320 = vst [vmem:[%s3885_s12 + $0x30] sm:$0xff] %v3028_v0   ;;  %v2088_v6 = vadd.f32 %v3462_v53, %v2087_v1  ;;  %v2351_v7 = vadd.f32 %v2350_v63, %v2224_v2 }
 0x11c   : > { %3351 = vst [vmem:[%s3885_s12 + $0x128] sm:$0xff] %v3183_v56   ;;  %3350 = vst [vmem:[%s3885_s12 + $0x120] sm:$0xff] %v3178_v58  }
 0x11d   : > { %v2352_v12 = vadd.f32 %v2351_v7, %v2225_v5  ;;  %v3466_v13 = vpop.f32.mrb[16].mxu0  ;;  %v2089_v14 = vadd.f32 %v3463_v59, %v2088_v6 }
 0x11e   : > { %v987_v15 = vpop.f32.mrb[17].mxu0  ;;  %v2229_v29 = vmul.f32 %v3466_v13, %v3466_v13 }
 0x11f   : > { %v2090_v16 = vadd.f32 %v2089_v14, %v987_v15  ;;  %v2227_v17 = vmul.f32 %v987_v15, %v987_v15  ;;  %v2353_v18 = vadd.f32 %v2352_v12, %v2226_v11  ;;  %v3467_v19 = vpop.f32.mrb[18].mxu0 }
 0x120   : > { %v3043_v20 = vpack.c.bf16 %v3467_v19, %v3466_v13  ;;  %v990_v21 = vpop.f32.mrb[19].mxu0  ;;  %v2230_v35 = vmul.f32 %v3467_v19, %v3467_v19 }
 0x121   : > { %v2354_v23 = vadd.f32 %v2353_v18, %v2227_v17  ;;  %v3038_v24 = vpack.c.bf16 %v990_v21, %v987_v15  ;;  %v2091_v25 = vadd.f32 %v2090_v16, %v990_v21  ;;  %v2228_v26 = vmul.f32 %v990_v21, %v990_v21  ;;  %v4078_v15 = vpop.f32.mrb[13].mxu1 }
 0x122   : > { %3323 = vst [vmem:[%s3885_s12 + $0x48] sm:$0xff] %v3043_v20   ;;  %v4081_v16 = vpop.f32.mrb[14].mxu1 }
 0x123   : > { %3322 = vst [vmem:[%s3885_s12 + $0x40] sm:$0xff] %v3038_v24   ;;  %v2092_v30 = vadd.f32 %v3466_v13, %v2091_v25  ;;  %v2355_v31 = vadd.f32 %v2354_v23, %v2228_v26  ;;  %v3193_v20 = vpack.c.bf16 %v4081_v16, %v4076_v10  ;;  %v4086_v21 = vpop.f32.mrb[15].mxu1 }
 0x124   : > { %v3188_v23 = vpack.c.bf16 %v4086_v21, %v4078_v15 }
 0x125   : > { %v2356_v36 = vadd.f32 %v2355_v31, %v2229_v29  ;;  %v3470_v37 = vpop.f32.mrb[20].mxu0  ;;  %v2093_v38 = vadd.f32 %v3467_v19, %v2092_v30  ;;  %3353 = vst [vmem:[%s3885_s12 + $0x138] sm:$0xff] %v3193_v20  }
 0x126   : > { %v1003_v39 = vpop.f32.mrb[21].mxu0  ;;  %v2233_v53 = vmul.f32 %v3470_v37, %v3470_v37  ;;  %3352 = vst [vmem:[%s3885_s12 + $0x130] sm:$0xff] %v3188_v23  }
 0x127   : > { %v2094_v40 = vadd.f32 %v2093_v38, %v1003_v39  ;;  %v2231_v41 = vmul.f32 %v1003_v39, %v1003_v39  ;;  %v2357_v42 = vadd.f32 %v2356_v36, %v2230_v35  ;;  %v3471_v43 = vpop.f32.mrb[22].mxu0  ;;  %v4092_v38 = vpop.f32.mrb[16].mxu1 }
 0x128   : > { %v3053_v44 = vpack.c.bf16 %v3471_v43, %v3470_v37  ;;  %v1006_v45 = vpop.f32.mrb[23].mxu0  ;;  %v2234_v59 = vmul.f32 %v3471_v43, %v3471_v43 }
 0x129   : > { %v2358_v47 = vadd.f32 %v2357_v42, %v2231_v41  ;;  %v3048_v48 = vpack.c.bf16 %v1006_v45, %v1003_v39  ;;  %v2095_v49 = vadd.f32 %v2094_v40, %v1006_v45  ;;  %v2232_v50 = vmul.f32 %v1006_v45, %v1006_v45 }
 0x12a   : > { %3325 = vst [vmem:[%s3885_s12 + $0x58] sm:$0xff] %v3053_v44  }
 0x12b   : > { %3324 = vst [vmem:[%s3885_s12 + $0x50] sm:$0xff] %v3048_v48   ;;  %v2096_v54 = vadd.f32 %v3470_v37, %v2095_v49  ;;  %v2359_v55 = vadd.f32 %v2358_v47, %v2232_v50 }
 0x12d   : > { %v2360_v60 = vadd.f32 %v2359_v55, %v2233_v53  ;;  %v3474_v61 = vpop.f32.mrb[24].mxu0  ;;  %v2097_v63 = vadd.f32 %v3471_v43, %v2096_v54  ;;  %v4094_v43 = vpop.f32.mrb[17].mxu1 }
 0x12e   : > { %v1019_v0 = vpop.f32.mrb[25].mxu0  ;;  %v2237_v17 = vmul.f32 %v3474_v61, %v3474_v61  ;;  %v4097_v44 = vpop.f32.mrb[18].mxu1 }
 0x12f   : > { %v2098_v1 = vadd.f32 %v2097_v63, %v1019_v0  ;;  %v2235_v2 = vmul.f32 %v1019_v0, %v1019_v0  ;;  %v2361_v5 = vadd.f32 %v2360_v60, %v2234_v59  ;;  %v3475_v6 = vpop.f32.mrb[26].mxu0  ;;  %v3203_v49 = vpack.c.bf16 %v4097_v44, %v4092_v38  ;;  %v4102_v50 = vpop.f32.mrb[19].mxu1 }
 0x130   : > { %v3063_v7 = vpack.c.bf16 %v3475_v6, %v3474_v61  ;;  %v1022_v8 = vpop.f32.mrb[27].mxu0  ;;  %v2238_v24 = vmul.f32 %v3475_v6, %v3475_v6  ;;  %v3198_v53 = vpack.c.bf16 %v4102_v50, %v4094_v43 }
 0x131   : > { %v2362_v11 = vadd.f32 %v2361_v5, %v2235_v2  ;;  %v3058_v12 = vpack.c.bf16 %v1022_v8, %v1019_v0  ;;  %v2099_v13 = vadd.f32 %v2098_v1, %v1022_v8  ;;  %v2236_v14 = vmul.f32 %v1022_v8, %v1022_v8  ;;  %3355 = vst [vmem:[%s3885_s12 + $0x148] sm:$0xff] %v3203_v49   ;;  %v4108_v5 = vpop.f32.mrb[20].mxu1 }
 0x132   : > { %3327 = vst [vmem:[%s3885_s12 + $0x68] sm:$0xff] %v3063_v7   ;;  %3354 = vst [vmem:[%s3885_s12 + $0x140] sm:$0xff] %v3198_v53  }
 0x133   : > { %3326 = vst [vmem:[%s3885_s12 + $0x60] sm:$0xff] %v3058_v12   ;;  %v2100_v18 = vadd.f32 %v3474_v61, %v2099_v13  ;;  %v2363_v19 = vadd.f32 %v2362_v11, %v2236_v14  ;;  %v4110_v12 = vpop.f32.mrb[21].mxu1 }
 0x134   : > { %v4113_v13 = vpop.f32.mrb[22].mxu1 }
 0x135   : > { %v2364_v25 = vadd.f32 %v2363_v19, %v2237_v17  ;;  %v3478_v26 = vpop.f32.mrb[28].mxu0  ;;  %v2101_v29 = vadd.f32 %v3475_v6, %v2100_v18  ;;  %v3213_v19 = vpack.c.bf16 %v4113_v13, %v4108_v5  ;;  %v4118_v20 = vpop.f32.mrb[23].mxu1 }
 0x136   : > { %v1035_v30 = vpop.f32.mrb[29].mxu0  ;;  %v2241_v45 = vmul.f32 %v3478_v26, %v3478_v26  ;;  %v3208_v23 = vpack.c.bf16 %v4118_v20, %v4110_v12 }
 0x137   : > { %v2102_v31 = vadd.f32 %v2101_v29, %v1035_v30  ;;  %v2239_v32 = vmul.f32 %v1035_v30, %v1035_v30  ;;  %v2365_v34 = vadd.f32 %v2364_v25, %v2238_v24  ;;  %v3479_v35 = vpop.f32.mrb[30].mxu0  ;;  %3357 = vst [vmem:[%s3885_s12 + $0x158] sm:$0xff] %v3213_v19  }
 0x138   : > { %v3073_v36 = vpack.c.bf16 %v3479_v35, %v3478_v26  ;;  %v1038_v37 = vpop.f32.mrb[31].mxu0  ;;  %v2242_v54 = vmul.f32 %v3479_v35, %v3479_v35  ;;  %3356 = vst [vmem:[%s3885_s12 + $0x150] sm:$0xff] %v3208_v23  }
 0x139   : > { %v2366_v39 = vadd.f32 %v2365_v34, %v2239_v32  ;;  %v3068_v40 = vpack.c.bf16 %v1038_v37, %v1035_v30  ;;  %v2103_v41 = vadd.f32 %v2102_v31, %v1038_v37  ;;  %v2240_v42 = vmul.f32 %v1038_v37, %v1038_v37 }
 0x13a   : > { %3329 = vst [vmem:[%s3885_s12 + $0x78] sm:$0xff] %v3073_v36  }
 0x13b   : > { %3328 = vst [vmem:[%s3885_s12 + $0x70] sm:$0xff] %v3068_v40   ;;  %v2104_v47 = vadd.f32 %v3478_v26, %v2103_v41  ;;  %v2367_v48 = vadd.f32 %v2366_v39, %v2240_v42  ;;  %v4124_v39 = vpop.f32.mrb[24].mxu1 }
 0x13d   : > { %v2368_v55 = vadd.f32 %v2367_v48, %v2241_v45  ;;  %v3482_v56 = vpop.f32.mrb[32].mxu0  ;;  %v2105_v58 = vadd.f32 %v3479_v35, %v2104_v47  ;;  %v4126_v47 = vpop.f32.mrb[25].mxu1 }
 0x13e   : > { %v1051_v59 = vpop.f32.mrb[33].mxu0  ;;  %v2245_v14 = vmul.f32 %v3482_v56, %v3482_v56  ;;  %v4129_v48 = vpop.f32.mrb[26].mxu1 }
 0x13f   : > { %v2106_v60 = vadd.f32 %v2105_v58, %v1051_v59  ;;  %v2243_v61 = vmul.f32 %v1051_v59, %v1051_v59  ;;  %v2369_v63 = vadd.f32 %v2368_v55, %v2242_v54  ;;  %v3483_v0 = vpop.f32.mrb[34].mxu0  ;;  %v3223_v55 = vpack.c.bf16 %v4129_v48, %v4124_v39 }
 0x140   : > { %v3083_v1 = vpack.c.bf16 %v3483_v0, %v3482_v56  ;;  %v1054_v2 = vpop.f32.mrb[35].mxu0  ;;  %v2246_v24 = vmul.f32 %v3483_v0, %v3483_v0 }
 0x141   : > { %v2370_v6 = vadd.f32 %v2369_v63, %v2243_v61  ;;  %v3078_v7 = vpack.c.bf16 %v1054_v2, %v1051_v59  ;;  %v2107_v8 = vadd.f32 %v2106_v60, %v1054_v2  ;;  %v2244_v11 = vmul.f32 %v1054_v2, %v1054_v2  ;;  %3359 = vst [vmem:[%s3885_s12 + $0x168] sm:$0xff] %v3223_v55  }
 0x142   : > { %3331 = vst [vmem:[%s3885_s12 + $0x88] sm:$0xff] %v3083_v1  }
 0x143   : > { %3330 = vst [vmem:[%s3885_s12 + $0x80] sm:$0xff] %v3078_v7   ;;  %v2108_v17 = vadd.f32 %v3482_v56, %v2107_v8  ;;  %v2371_v18 = vadd.f32 %v2370_v6, %v2244_v11  ;;  %v4134_v56 = vpop.f32.mrb[27].mxu1 }
 0x144   : > { %v3218_v58 = vpack.c.bf16 %v4134_v56, %v4126_v47 }
 0x145   : > { %v2372_v25 = vadd.f32 %v2371_v18, %v2245_v14  ;;  %v3486_v26 = vpop.f32.mrb[36].mxu0  ;;  %v2109_v29 = vadd.f32 %v3483_v0, %v2108_v17  ;;  %v4140_v14 = vpop.f32.mrb[28].mxu1 }
 0x146   : > { %v1067_v30 = vpop.f32.mrb[37].mxu0  ;;  %v2249_v49 = vmul.f32 %v3486_v26, %v3486_v26  ;;  %3358 = vst [vmem:[%s3885_s12 + $0x160] sm:$0xff] %v3218_v58  }
 0x147   : > { %v2110_v31 = vadd.f32 %v2109_v29, %v1067_v30  ;;  %v2247_v32 = vmul.f32 %v1067_v30, %v1067_v30  ;;  %v2373_v34 = vadd.f32 %v2372_v25, %v2246_v24  ;;  %v3487_v35 = vpop.f32.mrb[38].mxu0  ;;  %v4142_v24 = vpop.f32.mrb[29].mxu1 }
 0x148   : > { %v3093_v36 = vpack.c.bf16 %v3487_v35, %v3486_v26  ;;  %v1070_v37 = vpop.f32.mrb[39].mxu0  ;;  %v2250_v59 = vmul.f32 %v3487_v35, %v3487_v35  ;;  %v4145_v25 = vpop.f32.mrb[30].mxu1 }
 0x149   : > { %v2374_v40 = vadd.f32 %v2373_v34, %v2247_v32  ;;  %v3088_v41 = vpack.c.bf16 %v1070_v37, %v1067_v30  ;;  %v2111_v42 = vadd.f32 %v2110_v31, %v1070_v37  ;;  %v2248_v45 = vmul.f32 %v1070_v37, %v1070_v37  ;;  %v4150_v32 = vpop.f32.mrb[31].mxu1 }
 0x14a   : > { %3333 = vst [vmem:[%s3885_s12 + $0x98] sm:$0xff] %v3093_v36   ;;  %v3233_v31 = vpack.c.bf16 %v4145_v25, %v4140_v14  ;;  %v3228_v34 = vpack.c.bf16 %v4150_v32, %v4142_v24  ;;  %v4156_v58 = vpop.f32.mrb[32].mxu1 }
 0x14b   : > { %3332 = vst [vmem:[%s3885_s12 + $0x90] sm:$0xff] %v3088_v41   ;;  %v2112_v53 = vadd.f32 %v3486_v26, %v2111_v42  ;;  %v2375_v54 = vadd.f32 %v2374_v40, %v2248_v45 }
 0x14c   : > { %3361 = vst [vmem:[%s3885_s12 + $0x178] sm:$0xff] %v3233_v31   ;;  %3360 = vst [vmem:[%s3885_s12 + $0x170] sm:$0xff] %v3228_v34  }
 0x14d   : > { %v2376_v60 = vadd.f32 %v2375_v54, %v2249_v49  ;;  %v3490_v61 = vpop.f32.mrb[40].mxu0  ;;  %v2113_v63 = vadd.f32 %v3487_v35, %v2112_v53 }
 0x14e   : > { %v1083_v0 = vpop.f32.mrb[41].mxu0  ;;  %v2253_v26 = vmul.f32 %v3490_v61, %v3490_v61 }
 0x14f   : > { %v2114_v1 = vadd.f32 %v2113_v63, %v1083_v0  ;;  %v2251_v2 = vmul.f32 %v1083_v0, %v1083_v0  ;;  %v2377_v6 = vadd.f32 %v2376_v60, %v2250_v59  ;;  %v3491_v7 = vpop.f32.mrb[42].mxu0 }
 0x150   : > { %v3103_v8 = vpack.c.bf16 %v3491_v7, %v3490_v61  ;;  %v1086_v11 = vpop.f32.mrb[43].mxu0  ;;  %v2254_v35 = vmul.f32 %v3491_v7, %v3491_v7 }
 0x151   : > { %v2378_v17 = vadd.f32 %v2377_v6, %v2251_v2  ;;  %v3098_v18 = vpack.c.bf16 %v1086_v11, %v1083_v0  ;;  %v2115_v19 = vadd.f32 %v2114_v1, %v1086_v11  ;;  %v2252_v23 = vmul.f32 %v1086_v11, %v1086_v11  ;;  %v4158_v0 = vpop.f32.mrb[33].mxu1 }
 0x152   : > { %3335 = vst [vmem:[%s3885_s12 + $0xa8] sm:$0xff] %v3103_v8   ;;  %v4161_v1 = vpop.f32.mrb[34].mxu1 }
 0x153   : > { %3334 = vst [vmem:[%s3885_s12 + $0xa0] sm:$0xff] %v3098_v18   ;;  %v2116_v29 = vadd.f32 %v3490_v61, %v2115_v19  ;;  %v2379_v30 = vadd.f32 %v2378_v17, %v2252_v23  ;;  %v3243_v8 = vpack.c.bf16 %v4161_v1, %v4156_v58  ;;  %v4166_v11 = vpop.f32.mrb[35].mxu1 }
 0x154   : > { %v3238_v17 = vpack.c.bf16 %v4166_v11, %v4158_v0 }
 0x155   : > { %v2380_v36 = vadd.f32 %v2379_v30, %v2253_v26  ;;  %v3494_v37 = vpop.f32.mrb[44].mxu0  ;;  %v2117_v40 = vadd.f32 %v3491_v7, %v2116_v29  ;;  %3363 = vst [vmem:[%s3885_s12 + $0x188] sm:$0xff] %v3243_v8  }
 0x156   : > { %v1099_v41 = vpop.f32.mrb[45].mxu0  ;;  %v2257_v2 = vmul.f32 %v3494_v37, %v3494_v37  ;;  %3362 = vst [vmem:[%s3885_s12 + $0x180] sm:$0xff] %v3238_v17  }
 0x157   : > { %v2118_v42 = vadd.f32 %v2117_v40, %v1099_v41  ;;  %v2255_v45 = vmul.f32 %v1099_v41, %v1099_v41  ;;  %v2381_v49 = vadd.f32 %v2380_v36, %v2254_v35  ;;  %v3495_v53 = vpop.f32.mrb[46].mxu0  ;;  %v4172_v40 = vpop.f32.mrb[36].mxu1 }
 0x158   : > { %v3113_v54 = vpack.c.bf16 %v3495_v53, %v3494_v37  ;;  %v1102_v55 = vpop.f32.mrb[47].mxu0  ;;  %v2258_v18 = vmul.f32 %v3495_v53, %v3495_v53 }
 0x159   : > { %v2382_v59 = vadd.f32 %v2381_v49, %v2255_v45  ;;  %v3108_v60 = vpack.c.bf16 %v1102_v55, %v1099_v41  ;;  %v2119_v61 = vadd.f32 %v2118_v42, %v1102_v55  ;;  %v2256_v63 = vmul.f32 %v1102_v55, %v1102_v55 }
 0x15a   : > { %3337 = vst [vmem:[%s3885_s12 + $0xb8] sm:$0xff] %v3113_v54   ;;  %v4174_v54 = vpop.f32.mrb[37].mxu1 }
 0x15b   : > { %3336 = vst [vmem:[%s3885_s12 + $0xb0] sm:$0xff] %v3108_v60   ;;  %v2120_v6 = vadd.f32 %v3494_v37, %v2119_v61  ;;  %v2383_v7 = vadd.f32 %v2382_v59, %v2256_v63 }
 0x15d   : > { %v2384_v19 = vadd.f32 %v2383_v7, %v2257_v2  ;;  %v3498_v23 = vpop.f32.mrb[48].mxu0  ;;  %v2121_v26 = vadd.f32 %v3495_v53, %v2120_v6  ;;  %v4177_v53 = vpop.f32.mrb[38].mxu1 }
 0x15e   : > { %v1115_v29 = vpop.f32.mrb[49].mxu0  ;;  %v2261_v55 = vmul.f32 %v3498_v23, %v3498_v23  ;;  %v3253_v61 = vpack.c.bf16 %v4177_v53, %v4172_v40  ;;  %v4182_v63 = vpop.f32.mrb[39].mxu1 }
 0x15f   : > { %v2122_v30 = vadd.f32 %v2121_v26, %v1115_v29  ;;  %v2259_v31 = vmul.f32 %v1115_v29, %v1115_v29  ;;  %v2385_v34 = vadd.f32 %v2384_v19, %v2258_v18  ;;  %v3499_v35 = vpop.f32.mrb[50].mxu0  ;;  %v3248_v2 = vpack.c.bf16 %v4182_v63, %v4174_v54 }
 0x160   : > { %v3123_v36 = vpack.c.bf16 %v3499_v35, %v3498_v23  ;;  %v1118_v37 = vpop.f32.mrb[51].mxu0  ;;  %v2262_v6 = vmul.f32 %v3499_v35, %v3499_v35  ;;  %3365 = vst [vmem:[%s3885_s12 + $0x198] sm:$0xff] %v3253_v61  }
 0x161   : > { %v2386_v41 = vadd.f32 %v2385_v34, %v2259_v31  ;;  %v3118_v42 = vpack.c.bf16 %v1118_v37, %v1115_v29  ;;  %v2123_v45 = vadd.f32 %v2122_v30, %v1118_v37  ;;  %v2260_v49 = vmul.f32 %v1118_v37, %v1118_v37  ;;  %3364 = vst [vmem:[%s3885_s12 + $0x190] sm:$0xff] %v3248_v2   ;;  %v4188_v34 = vpop.f32.mrb[40].mxu1 }
 0x162   : > { %3339 = vst [vmem:[%s3885_s12 + $0xc8] sm:$0xff] %v3123_v36   ;;  %4569 = vst [vmem:[#allocation10_spill] sm:$0xff] %v4188_v34 }
 0x163   : > { %3338 = vst [vmem:[%s3885_s12 + $0xc0] sm:$0xff] %v3118_v42   ;;  %v2124_v59 = vadd.f32 %v3498_v23, %v2123_v45  ;;  %v2387_v60 = vadd.f32 %v2386_v41, %v2260_v49  ;;  %v4190_v45 = vpop.f32.mrb[41].mxu1 }
 0x165   : > { %v2388_v7 = vadd.f32 %v2387_v60, %v2261_v55  ;;  %v3502_v8 = vpop.f32.mrb[52].mxu0  ;;  %v2125_v17 = vadd.f32 %v3499_v35, %v2124_v59  ;;  %v4193_v35 = vpop.f32.mrb[42].mxu1 }
 0x166   : > { %v1131_v18 = vpop.f32.mrb[53].mxu0  ;;  %4570 = vst [vmem:[#allocation11_spill] sm:$0xff] %v4193_v35  ;;  %v2265_v49 = vmul.f32 %v3502_v8, %v3502_v8  ;;  %v3263_v60 = vpack.c.bf16 %v4193_v35, %v4188_v34  ;;  %v4198_v61 = vpop.f32.mrb[43].mxu1 }
 0x167   : > { %v2126_v19 = vadd.f32 %v2125_v17, %v1131_v18  ;;  %v2263_v23 = vmul.f32 %v1131_v18, %v1131_v18  ;;  %v2389_v26 = vadd.f32 %v2388_v7, %v2262_v6  ;;  %v3503_v29 = vpop.f32.mrb[54].mxu0  ;;  %v3258_v2 = vpack.c.bf16 %v4198_v61, %v4190_v45 }
 0x168   : > { %v3133_v30 = vpack.c.bf16 %v3503_v29, %v3502_v8  ;;  %v1134_v31 = vpop.f32.mrb[55].mxu0  ;;  %v2266_v6 = vmul.f32 %v3503_v29, %v3503_v29  ;;  %3367 = vst [vmem:[%s3885_s12 + $0x1a8] sm:$0xff] %v3263_v60  }
 0x169   : > { %v2390_v36 = vadd.f32 %v2389_v26, %v2263_v23  ;;  %v3128_v37 = vpack.c.bf16 %v1134_v31, %v1131_v18  ;;  %v2127_v41 = vadd.f32 %v2126_v19, %v1134_v31  ;;  %v2264_v42 = vmul.f32 %v1134_v31, %v1134_v31  ;;  %3366 = vst [vmem:[%s3885_s12 + $0x1a0] sm:$0xff] %v3258_v2  }
 0x16a   : > { %3341 = vst [vmem:[%s3885_s12 + $0xd8] sm:$0xff] %v3133_v30  }
 0x16b   : > { %3340 = vst [vmem:[%s3885_s12 + $0xd0] sm:$0xff] %v3128_v37   ;;  %v2128_v55 = vadd.f32 %v3502_v8, %v2127_v41  ;;  %v2391_v59 = vadd.f32 %v2390_v36, %v2264_v42  ;;  %v4204_v37 = vpop.f32.mrb[44].mxu1 }
 0x16c   : > { %4571 = vst [vmem:[#allocation12_spill] sm:$0xff] %v4204_v37 }
 0x16d   : > { %v2392_v7 = vadd.f32 %v2391_v59, %v2265_v49  ;;  %v3506_v17 = vpop.f32.mrb[56].mxu0  ;;  %v2129_v18 = vadd.f32 %v3503_v29, %v2128_v55  ;;  %v4206_v59 = vpop.f32.mrb[45].mxu1 }
 0x16e   : > { %v1147_v19 = vpop.f32.mrb[57].mxu0  ;;  %v4209_v29 = vpop.f32.mrb[46].mxu1  ;;  %v2269_v55 = vmul.f32 %v3506_v17, %v3506_v17 }
 0x16f   : > { %v2130_v23 = vadd.f32 %v2129_v18, %v1147_v19  ;;  %v2267_v8 = vmul.f32 %v1147_v19, %v1147_v19  ;;  %v2393_v26 = vadd.f32 %v2392_v7, %v2266_v6  ;;  %v3507_v30 = vpop.f32.mrb[58].mxu0  ;;  %4572 = vst [vmem:[#allocation13_spill] sm:$0xff] %v4209_v29  ;;  %v3273_v6 = vpack.c.bf16 %v4209_v29, %v4204_v37  ;;  %v4214_v7 = vpop.f32.mrb[47].mxu1 }
 0x170   : > { %v3143_v31 = vpack.c.bf16 %v3507_v30, %v3506_v17  ;;  %v1150_v36 = vpop.f32.mrb[59].mxu0  ;;  %4573 = vst [vmem:[#allocation14_spill] sm:$0xff] %v4214_v7  ;;  %v3268_v18 = vpack.c.bf16 %v4214_v7, %v4206_v59  ;;  %v4220_v29 = vpop.f32.mrb[48].mxu1 }
 0x171   : > { %v2394_v41 = vadd.f32 %v2393_v26, %v2267_v8  ;;  %v3138_v42 = vpack.c.bf16 %v1150_v36, %v1147_v19  ;;  %v2131_v35 = vadd.f32 %v2130_v23, %v1150_v36  ;;  %v2268_v49 = vmul.f32 %v1150_v36, %v1150_v36  ;;  %3369 = vst [vmem:[%s3885_s12 + $0x1b8] sm:$0xff] %v3273_v6  }
 0x172   : > { %3343 = vst [vmem:[%s3885_s12 + $0xe8] sm:$0xff] %v3143_v31   ;;  %v2270_v19 = vmul.f32 %v3507_v30, %v3507_v30  ;;  %3368 = vst [vmem:[%s3885_s12 + $0x1b0] sm:$0xff] %v3268_v18  }
 0x173   : > { %3342 = vst [vmem:[%s3885_s12 + $0xe0] sm:$0xff] %v3138_v42   ;;  %v2132_v60 = vadd.f32 %v3506_v17, %v2131_v35  ;;  %v2395_v2 = vadd.f32 %v2394_v41, %v2268_v49 }
 0x175   : > { %v2396_v23 = vadd.f32 %v2395_v2, %v2269_v55  ;;  %v3510_v8 = vpop.f32.mrb[60].mxu0  ;;  %v2133_v26 = vadd.f32 %v3507_v30, %v2132_v60  ;;  %v4222_v30 = vpop.f32.mrb[49].mxu1 }
 0x176   : > { %v1163_v31 = vpop.f32.mrb[61].mxu0  ;;  %v4225_v60 = vpop.f32.mrb[50].mxu1  ;;  %v2273_v2 = vmul.f32 %v3510_v8, %v3510_v8 }
 0x177   : > { %v2134_v36 = vadd.f32 %v2133_v26, %v1163_v31  ;;  %v2271_v35 = vmul.f32 %v1163_v31, %v1163_v31  ;;  %v2397_v17 = vadd.f32 %v2396_v23, %v2270_v19  ;;  %v3511_v41 = vpop.f32.mrb[62].mxu0  ;;  %v3283_v19 = vpack.c.bf16 %v4225_v60, %v4220_v29  ;;  %v4230_v23 = vpop.f32.mrb[51].mxu1 }
 0x178   : > { %v3153_v42 = vpack.c.bf16 %v3511_v41, %v3510_v8  ;;  %v1166_v49 = vpop.f32.mrb[63].mxu0  ;;  %v3278_v26 = vpack.c.bf16 %v4230_v23, %v4222_v30 }
 0x179   : > { %v2398_v37 = vadd.f32 %v2397_v17, %v2271_v35  ;;  %v3148_v34 = vpack.c.bf16 %v1166_v49, %v1163_v31  ;;  %v2135_v7 = vadd.f32 %v2134_v36, %v1166_v49  ;;  %v2272_v55 = vmul.f32 %v1166_v49, %v1166_v49  ;;  %3371 = vst [vmem:[%s3885_s12 + $0x1c8] sm:$0xff] %v3283_v19  }
 0x17a   : > { %3345 = vst [vmem:[%s3885_s12 + $0xf8] sm:$0xff] %v3153_v42   ;;  %v2274_v31 = vmul.f32 %v3511_v41, %v3511_v41  ;;  %v2275_v17 = vmul.f32 %v4030_v3, %v4030_v3  ;;  %3370 = vst [vmem:[%s3885_s12 + $0x1c0] sm:$0xff] %v3278_v26   ;;  %v2276_v49 = vmul.f32 %v4038_v9, %v4038_v9 }
 0x17b   : > { %3344 = vst [vmem:[%s3885_s12 + $0xf0] sm:$0xff] %v3148_v34   ;;  %v2136_v6 = vadd.f32 %v3510_v8, %v2135_v7  ;;  %v2399_v18 = vadd.f32 %v2398_v37, %v2272_v55  ;;  %v4239_v37 = vpop.f32.mrb[52].mxu1 }
 0x17d   : > { %v2137_v36 = vadd.f32 %v3511_v41, %v2136_v6  ;;  %v2400_v35 = vadd.f32 %v2399_v18, %v2273_v2  ;;  %v4244_v41 = vpop.f32.mrb[53].mxu1  ;;  %v2277_v2 = vmul.f32 %v4028_v62, %v4028_v62 }
 0x17e   : > { %v4246_v55 = vpop.f32.mrb[54].mxu1 }
 0x17f   : > { %v2401_v42 = vadd.f32 %v2400_v35, %v2274_v31  ;;  %v2138_v34 = vadd.f32 %v2137_v36, %v4030_v3  ;;  %v3293_v18 = vpack.c.bf16 %v4246_v55, %v4239_v37  ;;  %v4253_v19 = vpop.f32.mrb[55].mxu1  ;;  %v2279_v35 = vmul.f32 %v4046_v27, %v4046_v27 }
 0x180   : > { %v3288_v26 = vpack.c.bf16 %v4253_v19, %v4244_v41 }
 0x181   : > { %v2402_v7 = vadd.f32 %v2401_v42, %v2275_v17  ;;  %v2139_v8 = vadd.f32 %v2138_v34, %v4038_v9  ;;  %v2278_v9 = vmul.f32 %v4033_v4, %v4033_v4  ;;  %3373 = vst [vmem:[%s3885_s12 + $0x1d8] sm:$0xff] %v3293_v18   ;;  %v4265_v42 = vpop.f32.mrb[56].mxu1 }
 0x182   : > { %3372 = vst [vmem:[%s3885_s12 + $0x1d0] sm:$0xff] %v3288_v26  }
 0x183   : > { %v2140_v6 = vadd.f32 %v4028_v62, %v2139_v8  ;;  %v2403_v3 = vadd.f32 %v2402_v7, %v2276_v49  ;;  %v2280_v8 = vmul.f32 %v4054_v33, %v4054_v33  ;;  %v4270_v49 = vpop.f32.mrb[57].mxu1 }
 0x185   : > { %v2404_v31 = vadd.f32 %v2403_v3, %v2277_v2  ;;  %v2141_v36 = vadd.f32 %v4033_v4, %v2140_v6  ;;  %v4272_v4 = vpop.f32.mrb[58].mxu1  ;;  %v2281_v2 = vmul.f32 %v4044_v22, %v4044_v22 }
 0x186   : > { %v3303_v3 = vpack.c.bf16 %v4272_v4, %v4265_v42  ;;  %v4279_v18 = vpop.f32.mrb[59].mxu1 }
 0x187   : > { %v2142_v62 = vadd.f32 %v2141_v36, %v4046_v27  ;;  %v2405_v17 = vadd.f32 %v2404_v31, %v2278_v9  ;;  %v3298_v26 = vpack.c.bf16 %v4279_v18, %v4270_v49  ;;  %v2283_v36 = vmul.f32 %v4062_v51, %v4062_v51 }
 0x188   : > { %3375 = vst [vmem:[%s3885_s12 + $0x1e8] sm:$0xff] %v3303_v3  }
 0x189   : > { %v2406_v34 = vadd.f32 %v2405_v17, %v2279_v35  ;;  %v2143_v7 = vadd.f32 %v2142_v62, %v4054_v33  ;;  %v2282_v33 = vmul.f32 %v4049_v28, %v4049_v28  ;;  %3374 = vst [vmem:[%s3885_s12 + $0x1e0] sm:$0xff] %v3298_v26   ;;  %v4291_v62 = vpop.f32.mrb[60].mxu1 }
 0x18b   : > { %v2144_v27 = vadd.f32 %v4044_v22, %v2143_v7  ;;  %v2407_v6 = vadd.f32 %v2406_v34, %v2280_v8  ;;  %v2284_v7 = vmul.f32 %v4070_v57, %v4070_v57  ;;  %v4296_v8 = vpop.f32.mrb[61].mxu1 }
 0x18d   : > { %v2408_v9 = vadd.f32 %v2407_v6, %v2281_v2  ;;  %v2145_v31 = vadd.f32 %v4049_v28, %v2144_v27  ;;  %v4298_v28 = vpop.f32.mrb[62].mxu1  ;;  %v2285_v2 = vmul.f32 %v4060_v46, %v4060_v46 }
 0x18e   : > { %v3313_v6 = vpack.c.bf16 %v4298_v28, %v4291_v62  ;;  %v4305_v3 = vpop.f32.mrb[63].mxu1 }
 0x18f   : > { %v2146_v22 = vadd.f32 %v2145_v31, %v4062_v51  ;;  %v2409_v35 = vadd.f32 %v2408_v9, %v2282_v33  ;;  %v3308_v26 = vpack.c.bf16 %v4305_v3, %v4296_v8  ;;  %v2287_v31 = vmul.f32 %v4078_v15, %v4078_v15 }
 0x190   : > { %3377 = vst [vmem:[%s3885_s12 + $0x1f8] sm:$0xff] %v3313_v6  }
 0x191   : > { %v2410_v17 = vadd.f32 %v2409_v35, %v2283_v36  ;;  %v2147_v34 = vadd.f32 %v2146_v22, %v4070_v57  ;;  %v2286_v57 = vmul.f32 %v4065_v52, %v4065_v52  ;;  %3376 = vst [vmem:[%s3885_s12 + $0x1f0] sm:$0xff] %v3308_v26  }
 0x193   : > { %v2148_v51 = vadd.f32 %v4060_v46, %v2147_v34  ;;  %v2411_v27 = vadd.f32 %v2410_v17, %v2284_v7  ;;  %v2288_v17 = vmul.f32 %v4086_v21, %v4086_v21  ;;  %v2289_v34 = vmul.f32 %v4076_v10, %v4076_v10 }
 0x195   : > { %v2412_v33 = vadd.f32 %v2411_v27, %v2285_v2  ;;  %v2149_v9 = vadd.f32 %v4065_v52, %v2148_v51  ;;  %v2290_v2 = vmul.f32 %v4081_v16, %v4081_v16 }
 0x197   : > { %v2150_v46 = vadd.f32 %v2149_v9, %v4078_v15  ;;  %v2413_v36 = vadd.f32 %v2412_v33, %v2286_v57  ;;  %v2291_v15 = vmul.f32 %v4094_v43, %v4094_v43  ;;  %v2292_v33 = vmul.f32 %v4102_v50, %v4102_v50 }
 0x199   : > { %v2414_v22 = vadd.f32 %v2413_v36, %v2287_v31  ;;  %v2151_v35 = vadd.f32 %v2150_v46, %v4086_v21 }
 0x19b   : > { %v2152_v7 = vadd.f32 %v4076_v10, %v2151_v35  ;;  %v2415_v52 = vadd.f32 %v2414_v22, %v2288_v17  ;;  %v2293_v10 = vmul.f32 %v4092_v38, %v4092_v38 }
 0x19d   : > { %v2416_v51 = vadd.f32 %v2415_v52, %v2289_v34  ;;  %v2153_v27 = vadd.f32 %v4081_v16, %v2152_v7  ;;  %v2294_v16 = vmul.f32 %v4097_v44, %v4097_v44  ;;  %v2296_v34 = vmul.f32 %v4118_v20, %v4118_v20 }
 0x19f   : > { %v2154_v6 = vadd.f32 %v2153_v27, %v4094_v43  ;;  %v2417_v26 = vadd.f32 %v2416_v51, %v2290_v2  ;;  %v2295_v43 = vmul.f32 %v4110_v12, %v4110_v12 }
 0x1a1   : > { %v2418_v57 = vadd.f32 %v2417_v26, %v2291_v15  ;;  %v2155_v21 = vadd.f32 %v2154_v6, %v4102_v50  ;;  %v2300_v26 = vmul.f32 %v4134_v56, %v4134_v56 }
 0x1a3   : > { %v2156_v9 = vadd.f32 %v4092_v38, %v2155_v21  ;;  %v2419_v31 = vadd.f32 %v2418_v57, %v2292_v33  ;;  %v2297_v38 = vmul.f32 %v4108_v5, %v4108_v5 }
 0x1a5   : > { %v2420_v46 = vadd.f32 %v2419_v31, %v2293_v10  ;;  %v2157_v36 = vadd.f32 %v4097_v44, %v2156_v9  ;;  %v2298_v44 = vmul.f32 %v4113_v13, %v4113_v13 }
 0x1a7   : > { %v2158_v22 = vadd.f32 %v2157_v36, %v4110_v12  ;;  %v2421_v35 = vadd.f32 %v2420_v46, %v2294_v16  ;;  %v2299_v12 = vmul.f32 %v4126_v47, %v4126_v47  ;;  %v2304_v46 = vmul.f32 %v4150_v32, %v4150_v32 }
 0x1a9   : > { %v2422_v17 = vadd.f32 %v2421_v35, %v2295_v43  ;;  %v2159_v50 = vadd.f32 %v2158_v22, %v4118_v20 }
 0x1ab   : > { %v2160_v7 = vadd.f32 %v4108_v5, %v2159_v50  ;;  %v2423_v52 = vadd.f32 %v2422_v17, %v2296_v34  ;;  %v2301_v5 = vmul.f32 %v4124_v39, %v4124_v39 }
 0x1ad   : > { %v2424_v2 = vadd.f32 %v2423_v52, %v2297_v38  ;;  %v2161_v51 = vadd.f32 %v4113_v13, %v2160_v7  ;;  %v2302_v13 = vmul.f32 %v4129_v48, %v4129_v48  ;;  %v2308_v38 = vmul.f32 %v4166_v11, %v4166_v11 }
 0x1af   : > { %v2162_v27 = vadd.f32 %v2161_v51, %v4126_v47  ;;  %v2425_v15 = vadd.f32 %v2424_v2, %v2298_v44  ;;  %v2303_v47 = vmul.f32 %v4142_v24, %v4142_v24 }
 0x1b1   : > { %v2426_v6 = vadd.f32 %v2425_v15, %v2299_v12  ;;  %v2163_v20 = vadd.f32 %v2162_v27, %v4134_v56  ;;  %v2312_v15 = vmul.f32 %v4182_v63, %v4182_v63 }
 0x1b3   : > { %v2164_v57 = vadd.f32 %v4124_v39, %v2163_v20  ;;  %v2427_v21 = vadd.f32 %v2426_v6, %v2300_v26  ;;  %v2305_v39 = vmul.f32 %v4140_v14, %v4140_v14 }
 0x1b5   : > { %v2428_v33 = vadd.f32 %v2427_v21, %v2301_v5  ;;  %v2165_v10 = vadd.f32 %v4129_v48, %v2164_v57  ;;  %v2306_v48 = vmul.f32 %v4145_v25, %v4145_v25 }
 0x1b7   : > { %v2166_v9 = vadd.f32 %v2165_v10, %v4142_v24  ;;  %v2429_v31 = vadd.f32 %v2428_v33, %v2302_v13  ;;  %v2307_v24 = vmul.f32 %v4158_v0, %v4158_v0  ;;  %v2316_v33 = vmul.f32 %v4198_v61, %v4198_v61 }
 0x1b9   : > { %v2430_v16 = vadd.f32 %v2429_v31, %v2303_v47  ;;  %v2167_v56 = vadd.f32 %v2166_v9, %v4150_v32  ;;  %v4575_v31 = vld [vmem:[#allocation11_spill] sm:$0xff] }
 0x1bb   : > { %v2168_v36 = vadd.f32 %v4140_v14, %v2167_v56  ;;  %v2431_v43 = vadd.f32 %v2430_v16, %v2304_v46  ;;  %v2309_v14 = vmul.f32 %v4156_v58, %v4156_v58 }
 0x1bd   : > { %v2432_v22 = vadd.f32 %v2431_v43, %v2305_v39  ;;  %v2169_v35 = vadd.f32 %v4145_v25, %v2168_v36  ;;  %v2310_v25 = vmul.f32 %v4161_v1, %v4161_v1 }
 0x1bf   : > { %v2170_v17 = vadd.f32 %v2169_v35, %v4158_v0  ;;  %v2433_v50 = vadd.f32 %v2432_v22, %v2306_v48  ;;  %v2311_v0 = vmul.f32 %v4174_v54, %v4174_v54  ;;  %v4577_v22 = vld [vmem:[#allocation12_spill] sm:$0xff] }
 0x1c0   : > { %v2321_v35 = vmul.f32 %v4577_v22, %v4577_v22 }
 0x1c1   : > { %v2434_v34 = vadd.f32 %v2433_v50, %v2307_v24  ;;  %v2171_v32 = vadd.f32 %v2170_v17, %v4166_v11  ;;  %v4578_v50 = vld [vmem:[#allocation13_spill] sm:$0xff] }
 0x1c3   : > { %v2172_v7 = vadd.f32 %v4156_v58, %v2171_v32  ;;  %v2435_v52 = vadd.f32 %v2434_v34, %v2308_v38  ;;  %v2313_v58 = vmul.f32 %v4172_v40, %v4172_v40  ;;  %v2322_v34 = vmul.f32 %v4578_v50, %v4578_v50 }
 0x1c5   : > { %v2436_v44 = vadd.f32 %v2435_v52, %v2309_v14  ;;  %v2173_v2 = vadd.f32 %v4161_v1, %v2172_v7  ;;  %v2314_v1 = vmul.f32 %v4177_v53, %v4177_v53 }
 0x1c7   : > { %v2174_v51 = vadd.f32 %v2173_v2, %v4174_v54  ;;  %v2437_v12 = vadd.f32 %v2436_v44, %v2310_v25  ;;  %v2315_v54 = vmul.f32 %v4190_v45, %v4190_v45  ;;  %v2324_v44 = vmul.f32 %v4230_v23, %v4230_v23 }
 0x1c8   : > { %v2325_v2 = vmul.f32 %v4220_v29, %v4220_v29 }
 0x1c9   : > { %v2438_v27 = vadd.f32 %v2437_v12, %v2311_v0  ;;  %v2175_v11 = vadd.f32 %v2174_v51, %v4182_v63  ;;  %v2326_v12 = vmul.f32 %v4225_v60, %v4225_v60 }
 0x1cb   : > { %v2176_v6 = vadd.f32 %v4172_v40, %v2175_v11  ;;  %v2439_v20 = vadd.f32 %v2438_v27, %v2312_v15  ;;  %v4574_v40 = vld [vmem:[#allocation10_spill] sm:$0xff] }
 0x1cc   : > { %v2317_v10 = vmul.f32 %v4574_v40, %v4574_v40 }
 0x1cd   : > { %v2440_v26 = vadd.f32 %v2439_v20, %v2313_v58  ;;  %v2177_v5 = vadd.f32 %v4177_v53, %v2176_v6  ;;  %v2318_v53 = vmul.f32 %v4575_v31, %v4575_v31  ;;  %v2328_v20 = vmul.f32 %v4253_v19, %v4253_v19 }
 0x1cf   : > { %v2178_v57 = vadd.f32 %v2177_v5, %v4190_v45  ;;  %v2441_v21 = vadd.f32 %v2440_v26, %v2314_v1  ;;  %v2319_v45 = vmul.f32 %v4206_v59, %v4206_v59 }
 0x1d1   : > { %v2442_v13 = vadd.f32 %v2441_v21, %v2315_v54  ;;  %v2179_v63 = vadd.f32 %v2178_v57, %v4198_v61  ;;  %v4576_v61 = vld [vmem:[#allocation14_spill] sm:$0xff] }
 0x1d2   : > { %v2320_v48 = vmul.f32 %v4576_v61, %v4576_v61 }
 0x1d3   : > { %v2180_v47 = vadd.f32 %v4574_v40, %v2179_v63  ;;  %v2443_v9 = vadd.f32 %v2442_v13, %v2316_v33  ;;  %v2332_v63 = vmul.f32 %v4279_v18, %v4279_v18 }
 0x1d5   : > { %v2444_v16 = vadd.f32 %v2443_v9, %v2317_v10  ;;  %v2181_v56 = vadd.f32 %v4575_v31, %v2180_v47 }
 0x1d7   : > { %v2182_v46 = vadd.f32 %v2181_v56, %v4206_v59  ;;  %v2445_v39 = vadd.f32 %v2444_v16, %v2318_v53  ;;  %v2323_v59 = vmul.f32 %v4222_v30, %v4222_v30  ;;  %v2336_v16 = vmul.f32 %v4305_v3, %v4305_v3 }
 0x1d9   : > { %v2446_v36 = vadd.f32 %v2445_v39, %v2319_v45  ;;  %v2183_v43 = vadd.f32 %v2182_v46, %v4576_v61 }
 0x1db   : > { %v2184_v24 = vadd.f32 %v4577_v22, %v2183_v43  ;;  %v2447_v17 = vadd.f32 %v2446_v36, %v2320_v48 }
 0x1dd   : > { %v2448_v32 = vadd.f32 %v2447_v17, %v2321_v35  ;;  %v2185_v38 = vadd.f32 %v4578_v50, %v2184_v24  ;;  %v2074_v50 = vld [vmem:[#allocation2] sm:$0x1] }
 0x1df   : > { %v2186_v14 = vadd.f32 %v2185_v38, %v4222_v30  ;;  %v2449_v7 = vadd.f32 %v2448_v32, %v2322_v34  ;;  %v2327_v30 = vmul.f32 %v4244_v41, %v4244_v41  ;;  %v2210_v32 = vld [vmem:[#allocation3] sm:$0x1] }
 0x1e1   : > { %v2450_v52 = vadd.f32 %v2449_v7, %v2323_v59  ;;  %v2187_v25 = vadd.f32 %v2186_v14, %v4230_v23 }
 0x1e3   : > { %v2188_v0 = vadd.f32 %v4220_v29, %v2187_v25  ;;  %v2451_v51 = vadd.f32 %v2450_v52, %v2324_v44  ;;  %v2329_v29 = vmul.f32 %v4239_v37, %v4239_v37 }
 0x1e5   : > { %v2452_v27 = vadd.f32 %v2451_v51, %v2325_v2  ;;  %v2189_v11 = vadd.f32 %v4225_v60, %v2188_v0  ;;  %v2330_v60 = vmul.f32 %v4246_v55, %v4246_v55 }
 0x1e7   : > { %v2190_v15 = vadd.f32 %v2189_v11, %v4244_v41  ;;  %v2453_v58 = vadd.f32 %v2452_v27, %v2326_v12  ;;  %v2331_v41 = vmul.f32 %v4270_v49, %v4270_v49  ;;  %v2485_v12 = vld [vmem:[%s4553_s2] sm:$0x1] (!%p2858_p12) }
 0x1e9   : > { %v2454_v6 = vadd.f32 %v2453_v58, %v2327_v30  ;;  %v2191_v23 = vadd.f32 %v2190_v15, %v4253_v19  ;;  %v2490_v30 = vld [vmem:[%s4554_s3] sm:$0x1] (!%p2858_p12) }
 0x1eb   : > { %v2192_v1 = vadd.f32 %v4239_v37, %v2191_v23  ;;  %v2455_v26 = vadd.f32 %v2454_v6, %v2328_v20  ;;  %v2333_v37 = vmul.f32 %v4265_v42, %v4265_v42 }
 0x1ed   : > { %v2456_v5 = vadd.f32 %v2455_v26, %v2329_v29  ;;  %v2193_v54 = vadd.f32 %v4246_v55, %v2192_v1  ;;  %v2334_v55 = vmul.f32 %v4272_v4, %v4272_v4 }
 0x1ef   : > { %v2194_v57 = vadd.f32 %v2193_v54, %v4270_v49  ;;  %v2457_v21 = vadd.f32 %v2456_v5, %v2330_v60  ;;  %v2335_v49 = vmul.f32 %v4296_v8, %v4296_v8 }
 0x1f1   : > { %v2458_v13 = vadd.f32 %v2457_v21, %v2331_v41  ;;  %v2195_v19 = vadd.f32 %v2194_v57, %v4279_v18 }
 0x1f3   : > { %v2196_v33 = vadd.f32 %v4265_v42, %v2195_v19  ;;  %v2459_v40 = vadd.f32 %v2458_v13, %v2332_v63  ;;  %v2337_v42 = vmul.f32 %v4291_v62, %v4291_v62 }
 0x1f5   : > { %v2460_v10 = vadd.f32 %v2459_v40, %v2333_v37  ;;  %v2197_v47 = vadd.f32 %v4272_v4, %v2196_v33  ;;  %v2338_v4 = vmul.f32 %v4298_v28, %v4298_v28 }
 0x1f7   : > { %v2198_v9 = vadd.f32 %v2197_v47, %v4296_v8  ;;  %v2461_v31 = vadd.f32 %v2460_v10, %v2334_v55 }
 0x1f9   : > { %v2462_v53 = vadd.f32 %v2461_v31, %v2335_v49  ;;  %v2199_v18 = vadd.f32 %v2198_v9, %v4305_v3 }
 0x1fb   : > { %v2200_v56 = vadd.f32 %v4291_v62, %v2199_v18  ;;  %v2463_v45 = vadd.f32 %v2462_v53, %v2336_v16 }
 0x1fd   : > { %v2201_v46 = vadd.f32 %v4298_v28, %v2200_v56  ;;  %v2464_v39 = vadd.f32 %v2463_v45, %v2337_v42 }
 0x1ff   : > { %v2202_v8 = vrot.slane %v2201_v46, 4  ;;  %v2465_v36 = vadd.f32 %v2464_v39, %v2338_v4 }
 0x201   : > { %v2203_v61 = vadd.f32 %v2202_v8, %v2201_v46  ;;  %v2466_v43 = vrot.slane %v2465_v36, 4 }
 0x203   : > { %v2204_v48 = vrot.slane %v2203_v61, 2  ;;  %v2467_v22 = vadd.f32 %v2466_v43, %v2465_v36 }
 0x205   : > { %v2205_v35 = vadd.f32 %v2204_v48, %v2203_v61  ;;  %v2468_v3 = vrot.slane %v2467_v22, 2 }
 0x207   : > { %v2206_v24 = vrot.slane %v2205_v35, 1  ;;  %v2469_v17 = vadd.f32 %v2468_v3, %v2467_v22 }
 0x209   : > { %v2207_v34 = vadd.f32 %v2206_v24, %v2205_v35  ;;  %v2470_v62 = vrot.slane %v2469_v17, 1  ;;  %2477 = sbr.rel (%p2858_p12) target bundleno = 561 (0x231), region = 44 }
 0x20b   : > { %v2208_v38 = vadd.f32 %v2207_v34, %v2074_v50  ;;  %v2471_v59 = vadd.f32 %v2470_v62, %v2469_v17 }
 0x20d   : > { %2209 = vst [vmem:[#allocation2] sm:$0x1] %v2208_v38  ;;  %v2472_v14 = vadd.f32 %v2471_v59, %v2210_v32 }
 0x20f   : > { %2473 = vst [vmem:[#allocation3] sm:$0x1] %v2472_v14 }
 0x214   : > { %v2478_v28 = vld [vmem:[#allocation2] sm:$0x1] }
 0x215   : > { %v2479_v52 = vmul.f32 0.00048828125, %v2478_v28 }
 0x216   : > { %v2480_v7 = vld [vmem:[#allocation3] sm:$0x1] }
 0x217   : > { %v2481_v25 = vmul.f32 0.00048828125, %v2480_v7  ;;  %v2482_v44 = vmul.f32 %v2479_v52, %v2479_v52 }
 0x219   : > { %v2483_v2 = vsub.f32 %v2481_v25, %v2482_v44 }
 0x21b   : > { %v2484_v0 = vmax.f32 %v2483_v2, 0.0 }
 0x21d   : > { %v2486_v51 = vadd.f32 1e-05, %v2484_v0 }
 0x21f   : > { %3695 = vrsqrt.f32 %v2486_v51 }
 0x229   : > { %v3696_v27 = vpop.eup %3695 }
 0x22a   : > { %v2488_v11 = vmul.f32 %v3696_v27, %v2485_v12 }
 0x22c   : > { %2489 = vst [vmem:[#allocation6] sm:$0x1] %v2488_v11  ;;  %v2491_v15 = vmul.f32 %v2488_v11, %v2479_v52 }
 0x22e   : > { %v2492_v58 = vsub.f32 %v2490_v30, %v2491_v15 }
 0x230   : > { %2493 = vst [vmem:[#allocation6 + $0x1] sm:$0x1] %v2492_v58 }
 0x231 PF: > { %s2994_s6 = sshll.u32 %s3847_s22, 13  ;;  %s2508_s10 = sshll.u32 %s3885_s12, 4  ;;  %s4484_s10 = int_to_ptr.vmem [resolvable:$true] %s2508_s10 }
 0x232   : > { %s4481_s9 = scalar_lea.hbm %s4555_s4, %s2994_s6  ;;  %s4488_s11 = scalar_lea.sflag [#allocation5], %s213_s30 }
 0x233   : > { %s3697_s13 = scalar_lea.vmem %s4484_s10, 8192  ;;  %s3792_s14 = smov [#allocation4]  }
 0x234   : > { %p3698_p13 = scmp.ne.s32.totalorder %s4484_s10, %s3697_s13  ;;  %s3701_s15 = sshll.u32 %s3792_s14, 4  ;;  %s3702_s15 = int_to_ptr.vmem [resolvable:$false] %s3701_s15 }
 0x235   : > { %s3703_s16 = scalar_lea.vmem %s3702_s15, 16384  ;;  %p3704_p3 = scmp.lt.s32.totalorder %s4484_s10, %s3702_s15 }
 0x236   : > { %p3699_p0 = pnand %p3698_p13, %p3866_p5  ;;  %p3705_p4 = scmp.lt.s32.totalorder %s3703_s16, %s3697_s13 }
 0x238   : > { %p3700_p1 = pneg %p3699_p0  ;;  %p3706_p7 = por %p3705_p4, %p3704_p3 }
 0x23a   : > { %p3707_p8 = pnand %p3706_p7, %p3700_p1 }
 0x23c   : > { %3710 = shalt.err (!%p3707_p8)
}
 0x23d   : > { %s3711_s30 = scalar_lea.hbm %s4481_s9, 8192  ;;  %s3715_s23 = scalar_lea.hbm %s4555_s4, 16384 }
 0x23e   : > { %p3712_p9 = scmp.ne.s32.totalorder %s4481_s9, %s3711_s30  ;;  %p3716_p12 = scmp.lt.u32.totalorder %s4481_s9, %s4555_s4 }
 0x23f   : > { %p3717_p13 = scmp.lt.u32.totalorder %s3715_s23, %s3711_s30  ;;  %p3719_p1 = scmp.lt.u32.totalorder %s3711_s30, %s4481_s9 }
 0x240   : > { %p3713_p10 = pnand %p3712_p9, %p3866_p5 }
 0x241   : > { %p3718_p0 = por %p3717_p13, %p3716_p12 }
 0x242   : > { %p3714_p11 = pneg %p3713_p10 }
 0x243   : > { %p3720_p3 = por %p3719_p1, %p3718_p0 }
 0x245   : > { %p3721_p4 = pnand %p3720_p3, %p3714_p11 }
 0x247   : > { %3724 = shalt.err (!%p3721_p4)
}
 0x248   : > { %s3793_s6 = smov 64   ;;  %s3794_s7 = smov 4  }
 0x249   : > { %3580 = dma.vmem_to_hbm [thread:$0]  (%p3866_p5), %s4484_s10, 8192, %s4481_s9, %s4488_s11, %s3793_s6, %s3793_s6, %s3794_s7  }
 0x24a   : > { %s3795_s8 = smov [#allocation6]  }
 0x24b   : > { %s2522_s13 = sshll.u32 %s3795_s8, 4  ;;  %s2523_s13 = int_to_ptr.vmem [resolvable:$true] %s2522_s13 }
 0x24c   : > { %s3725_s14 = scalar_lea.vmem %s2523_s13, 32  ;;  %p3732_p10 = scmp.lt.s32.totalorder %s2523_s13, %s2523_s13 }
 0x24d   : > { %p3726_p7 = scmp.ne.s32.totalorder %s2523_s13, %s3725_s14  ;;  %p3733_p11 = scmp.lt.s32.totalorder %s3725_s14, %s3725_s14 }
 0x24f   : > { %p3727_p8 = pnand %p3726_p7, %p127_p2  ;;  %p3734_p12 = por %p3733_p11, %p3732_p10 }
 0x251   : > { %p3728_p9 = pneg %p3727_p8 }
 0x253   : > { %p3735_p13 = pnand %p3734_p12, %p3728_p9 }
 0x255   : > { %3738 = shalt.err (!%p3735_p13)
}
 0x256   : > { %s3739_s30 = scalar_lea.hbm %s4556_s5, 32 }
 0x257   : > { %p3740_p5 = scmp.ne.s32.totalorder %s4556_s5, %s3739_s30  ;;  %p3745_p3 = scmp.lt.u32.totalorder %s3739_s30, %s4556_s5 }
 0x259   : > { %p3741_p0 = pnand %p3740_p5, %p127_p2 }
 0x25b   : > { %p3742_p1 = pneg %p3741_p0 }
 0x25d   : > { %p3747_p4 = pnand %p3745_p3, %p3742_p1 }
 0x25f   : > { %3750 = shalt.err (!%p3747_p4)
}
 0x260   : > { %3582 = dma.vmem_to_hbm [thread:$0]  (%p127_p2), %s2523_s13, 32, %s4556_s5, [#allocation7]  }
 0x261   : > { %3768 = dma.done.wait (%p127_p2), [#allocation7], 32  }
 0x262   : > { %3770 = vsyncadd (%p127_p2), [#allocation7], 4294967264 }
 0x263 PF: > { %p3592_p7 = scmp.ge.s32.totalorder %s3789_s21, 2  ;;  %s2538_s23 = sand.u32 1, %s3777_s18  }
 0x264   : > { %s2539_s25 = scalar_lea.sflag [#allocation5], %s2538_s23 }
 0x265   : > { %p3587_p8 = pnand %p3592_p7, %p3870_p6 }
 0x267   : > { %3772 = dma.done.wait (!%p3587_p8), %s2539_s25, 8192  }
 0x268   : > { %3774 = vsyncadd (!%p3587_p8), %s2539_s25, 4294959104  ;;  %p17_p9 = scmp.ge.s32.totalorder %s3851_s24, 4   ;;  %s4579_s18 = smov %s3781_s19 }
 0x269   : > { %s4580_s19 = smov %s3785_s20  ;;  %s4581_s20 = smov %s3862_s27 }
 0x26a   : > { %s4582_s21 = smov %s3851_s24  ;;  %19 = sbr.rel (!%p17_p9) target bundleno = 4 (0x4), region = 87 }
 0x271   :  { %2544 = vsyncpa [#allocation5], 1 }
 0x272   :  { %2546 = vsyncpa [#allocation5 + $0x1], 1 }
 0x273   :  { %2547 = vsyncpa [#allocation7], 1 }

</bundles_post_ra>
